<compile_context>
chip_gen: v5e
topology: v5e:2x2
jax: 0.10.0
libtpu: 0.0.40
codegen_flags: <defaults>
</compile_context>

<pallas_src>
import functools

import jax
import jax.numpy as jnp
import numpy as np
from jax import lax
from jax.experimental import pallas as pl
from jax.experimental.pallas import tpu as pltpu

USE_BF16_MXU = True                      # bf16 MXU operands, f32 accumulation
_MXU_DTYPE = jnp.bfloat16 if USE_BF16_MXU else jnp.float32
_NUM_CLASSES = 10
_FC_PAD = 128                            # lane-dense FC output (sliced to 10 outside)


# ----------------------------- parameters ----------------------------------

def init_raw_params(key, nc_input, nc_middle):
    """Parameters in the original PyTorch layouts."""
    ks = jax.random.split(key, 5)

    def conv_w(k, cout, cin):
        bound = 1.0 / np.sqrt(cin * 9.0)
        return jax.random.uniform(k, (cout, cin, 3, 3), jnp.float32, -bound, bound)

    fc_in = 128
    fc_bound = 1.0 / np.sqrt(fc_in)
    return {
        "conv1": conv_w(ks[0], nc_middle, nc_input),
        "conv2": conv_w(ks[1], nc_middle // 2, nc_middle),
        "conv3": conv_w(ks[2], nc_middle // 4, nc_middle // 2),
        "prelu_alpha": jnp.float32(0.25),                # nn.PReLU() default
        "fc_w": jax.random.uniform(ks[3], (_NUM_CLASSES, fc_in), jnp.float32,
                                   -fc_bound, fc_bound),
        "fc_b": jax.random.uniform(ks[4], (_NUM_CLASSES,), jnp.float32,
                                   -fc_bound, fc_bound),
        # TODO(synk): ppg_fc / ppg_conv / ppg_relu exist in __init__ but are
        # never used in forward(), so they are not instantiated here.
    }


def _conv_taps(w, dtype):
    """[Cout, Cin, 3, 3] -> [9, Cin, Cout] per-tap matmul weights (t = kh*3+kw)."""
    cout, cin = w.shape[0], w.shape[1]
    return jnp.transpose(w, (2, 3, 1, 0)).reshape(9, cin, cout).astype(dtype)


def prepare_params(raw):
    """Hoist every weight re-layout out of the forward pass (done once)."""
    c0 = raw["conv1"].shape[1]
    c3 = raw["conv3"].shape[0]                 # ncMiddle // 4
    s_total = 128 // c3                        # final H3*W3 implied by Linear(128, 10)
    w1_taps = _conv_taps(raw["conv1"], _MXU_DTYPE)                # [9, c0, c1]
    # torch flatten index i = c*(H3*W3) + s  ->  rows ordered (s, c) to match the
    # in-kernel (spatial-major, channel-minor) flatten of the channels-last act.
    fc_w_r = raw["fc_w"].reshape(_NUM_CLASSES, c3, s_total).transpose(2, 1, 0)
    fc_w_r = fc_w_r.reshape(s_total * c3, _NUM_CLASSES)
    return {
        "w1_folded": w1_taps.reshape(9 * c0, w1_taps.shape[2]),   # [9*c0, c1]
        "w2": _conv_taps(raw["conv2"], _MXU_DTYPE),               # [9, c1, c2]
        "w3": _conv_taps(raw["conv3"], _MXU_DTYPE),               # [9, c2, c3]
        "alpha": jnp.asarray(raw["prelu_alpha"], jnp.float32).reshape(1, 1),
        "fc_w": jnp.pad(fc_w_r, ((0, 0), (0, _FC_PAD - _NUM_CLASSES))
                        ).astype(_MXU_DTYPE),                     # [128, 128]
        "fc_b": jnp.pad(raw["fc_b"].reshape(1, _NUM_CLASSES),
                        ((0, 0), (0, _FC_PAD - _NUM_CLASSES))).astype(jnp.float32),
    }


# ------------------------- fused Pallas forward -----------------------------

def _fused_predict(params, x_nchw):
    """conv1..conv3 + PReLU + FC for x [B, Cin, H, W] -> logits [B, 10]."""
    B, c0, H, W = x_nchw.shape
    c1 = params["w2"].shape[1]
    c2 = params["w2"].shape[2]
    c3 = params["w3"].shape[2]
    assert params["w1_folded"].shape == (9 * c0, c1)

    H1, W1 = H // 2, W // 2
    H2, W2 = H1 // 2, W1 // 2
    H3, W3 = H2 // 2, W2 // 2
    s_total = H3 * W3
    assert c3 * s_total == 128, "flatten size must match Linear(128, 10)"

    # Padded, HW-flattened activation geometry used inside the kernel.
    #   a1 flat index = b*flat1 + r*pitch1 + w   (r, w padded coords)
    #   a2 flat index = b*flat2 + r*pitch2 + w
    pitch1, rows1 = W1 + 2, H1 + 2
    flat1 = rows1 * pitch1
    pitch2, rows2 = W2 + 2, H2 + 2
    flat2 = rows2 * pitch2
    assert flat1 % 2 == 0 and flat2 % 2 == 0
    # Per-tap strided-window lengths (batch folded into the same progression):
    #   conv2 row j = (flat1//2)*b + pitch1*ho + wo,  conv3 analogous.
    L2 = (flat1 // 2) * (B - 1) + pitch1 * (H2 - 1) + (W2 - 1) + 1
    L3 = (flat2 // 2) * (B - 1) + pitch2 * (H3 - 1) + (W3 - 1) + 1
    assert (2 * pitch1 + 2) + 2 * (L2 - 1) < B * flat1   # strided reads in bounds
    assert (2 * pitch2 + 2) + 2 * (L3 - 1) < B * flat2

    # --- conv1 im2col in XLA (tiny, ~30 KB): rows ordered like the padded a1
    # layout, with zero rows at the pad ring so the matmul writes the padded
    # activation directly (no zeroing / scatter in the kernel). ---
    x = jnp.transpose(x_nchw, (0, 2, 3, 1))                       # NHWC
    xpad = jnp.pad(x, ((0, 0), (1, 1), (1, 1), (0, 0)))           # [B, H+2, W+2, c0]
    taps = []
    for kh in range(3):
        for kw in range(3):
            taps.append(lax.slice(xpad, (0, kh, kw, 0),
                                  (B, kh + 2 * H1, kw + 2 * W1, c0),
                                  (1, 2, 2, 1)))                  # [B, H1, W1, c0]
    col = jnp.concatenate(taps, axis=-1)                          # [B, H1, W1, 9*c0]
    colp = jnp.pad(col, ((0, 0), (1, 1), (1, 1), (0, 0)))         # pad ring -> zero rows
    x_col = colp.reshape(B * flat1, 9 * c0).astype(_MXU_DTYPE)    # [B*flat1, 9*c0]

    # Constant 0/1 selection matrix that scatters conv2's valid rows into the
    # padded conv3 input layout (computed at trace time, exact in bf16).
    s2 = np.zeros((B * flat2, L2), np.float32)
    for b in range(B):
        for ho in range(H2):
            for wo in range(W2):
                s2[b * flat2 + (ho + 1) * pitch2 + (wo + 1),
                   (flat1 // 2) * b + pitch1 * ho + wo] = 1.0
    s2 = jnp.asarray(s2).astype(_MXU_DTYPE)

    def kernel(xcol_ref, w1_ref, w2_ref, w3_ref, s2_ref, alpha_ref,
               fcw_ref, fcb_ref, out_ref, a1_ref, a2_ref, a3_ref):
        # conv1: ONE matmul produces the padded conv1 activation (pad rows = 0
        # because their im2col rows are zero).  f32 scratch, lane-dense store.
        a1_ref[...] = jnp.dot(xcol_ref[...], w1_ref[...],
                              preferred_element_type=jnp.float32)

        # conv2: 9 per-tap whole-map matmuls over sublane-strided flat windows
        # (batch folded into M).  Rows j = (flat1//2)*b + pitch1*ho + wo are the
        # valid outputs; in-between rows are harmless junk that S2 zeroes out.
        acc2 = None
        for kh in range(3):
            for kw in range(3):
                lhs = a1_ref[pl.ds(pitch1 * kh + kw, L2, stride=2), :]   # [L2, c1]
                p = jnp.dot(lhs.astype(_MXU_DTYPE), w2_ref[3 * kh + kw],
                            preferred_element_type=jnp.float32)         # [L2, c2]
                acc2 = p if acc2 is None else acc2 + p
        # Scatter valid rows into the padded conv3-input layout on the MXU
        # (selection is exact; pad ring comes out as zeros).
        a2_ref[...] = jnp.dot(s2_ref[...], acc2.astype(_MXU_DTYPE),
                              preferred_element_type=jnp.float32)        # [B*flat2, c2]

        # conv3: same per-tap whole-map structure.
        acc3 = None
        for kh in range(3):
            for kw in range(3):
                lhs = a2_ref[pl.ds(pitch2 * kh + kw, L3, stride=2), :]   # [L3, c2]
                p = jnp.dot(lhs.astype(_MXU_DTYPE), w3_ref[3 * kh + kw],
                            preferred_element_type=jnp.float32)          # [L3, c3]
                acc3 = p if acc3 is None else acc3 + p

        # PReLU (single vectorized select, f32) then repack the valid rows into
        # a lane-dense [B, 128] block (spatial-major, channel-minor) matching
        # the prepared FC weight layout.
        alpha = alpha_ref[0, 0]
        act = jnp.where(acc3 > 0, acc3, alpha * acc3)                    # [L3, c3]
        for b in range(B):
            for s in range(s_total):
                j = (flat2 // 2) * b + pitch2 * (s // W3) + (s % W3)
                a3_ref[pl.ds(b, 1), pl.ds(c3 * s, c3)] = act[j:j + 1, :]

        # Linear(128, 10): ONE [B,128]x[128,128] matmul + bias, lane-dense store.
        logits = jnp.dot(a3_ref[...].astype(_MXU_DTYPE), fcw_ref[...],
                         preferred_element_type=jnp.float32) + fcb_ref[...]
        out_ref[...] = logits

    vmem = pl.BlockSpec(memory_space=pltpu.MemorySpace.VMEM)
    smem = pl.BlockSpec(memory_space=pltpu.MemorySpace.SMEM)
    out = pl.pallas_call(
        kernel,
        out_shape=jax.ShapeDtypeStruct((B, _FC_PAD), jnp.float32),
        in_specs=[vmem, vmem, vmem, vmem, vmem, smem, vmem, vmem],
        out_specs=vmem,
        scratch_shapes=[
            pltpu.VMEM((B * flat1, c1), jnp.float32),   # padded conv1 act (flat)
            pltpu.VMEM((B * flat2, c2), jnp.float32),   # padded conv2 act (flat)
            pltpu.VMEM((B, _FC_PAD), jnp.float32),      # flattened conv3 act
        ],
        # TODO(synk): if B/H/W/ncMiddle grow, add a grid over batch/rows with
        # dimension_semantics=("parallel",) so v7x's two TensorCores split the
        # work, and re-derive scratch sizes against v7x's 64 MiB VMEM.
    )(x_col, params["w1_folded"], params["w2"], params["w3"], s2,
      params["alpha"], params["fc_w"], params["fc_b"])
    return out[:, :_NUM_CLASSES]


def ppgnet_forward(params, innerFeat, target_ppg, target_light, count,
                   skip_count, nc_input):
    """Matches PPGNet.forward (target_light / count / skip_count are unused)."""
    del target_light, count, skip_count
    x = innerFeat[:, :nc_input, :, :]
    rppg = _fused_predict(params, x)                 # [B, 10]
    rppg = rppg[:, :, None, None]                    # [B, 10, 1, 1]
    feat_slice = innerFeat[:, :nc_input, :, :]
    if target_ppg is None:
        return innerFeat, feat_slice, rppg
    remaining = innerFeat[:, nc_input:, :, :]
    new_innerFeat = jnp.concatenate([target_ppg, remaining], axis=1)
    return new_innerFeat, feat_slice, rppg


# ---------------------------- pure-XLA reference ----------------------------

def ppgnet_reference(raw, innerFeat, target_ppg, nc_input):
    x = innerFeat[:, :nc_input, :, :]
    dn = ("NCHW", "OIHW", "NCHW")
    for name in ("conv1", "conv2", "conv3"):
        x = lax.conv_general_dilated(x, raw[name], (2, 2), ((1, 1), (1, 1)),
                                     dimension_numbers=dn)
    x = jnp.where(x > 0, x, raw["prelu_alpha"] * x)
    xf = x.reshape(x.shape[0], -1)
    rppg = (xf @ raw["fc_w"].T + raw["fc_b"])[:, :, None, None]
    remaining = innerFeat[:, nc_input:, :, :]
    new_innerFeat = jnp.concatenate([target_ppg, remaining], axis=1)
    return new_innerFeat, innerFeat[:, :nc_input, :, :], rppg


# --------------------------------- main --------------------------------------

if __name__ == "__main__":
    # Shapes consistent with the module: flatten size must be 128,
    # i.e. (ncMiddle // 4) * (H // 8) * (W // 8) == 128 -> ncMiddle=128, H=W=16.
    ncInput, ncOutput, ncMiddle = 4, 4, 128
    B, C_total, H, W = 2, 8, 16, 16

    key = jax.random.PRNGKey(0)
    k_feat, k_ppg = jax.random.split(key)
    innerFeat = jax.random.normal(k_feat, (B, C_total, H, W), jnp.float32)
    target_ppg = jax.random.normal(k_ppg, (B, ncInput, H, W), jnp.float32)

    raw = init_raw_params(jax.random.PRNGKey(42), ncInput, ncMiddle)
    params = prepare_params(raw)

    fwd = jax.jit(functools.partial(ppgnet_forward, nc_input=ncInput))
    new_innerFeat, feat_slice, rppg = fwd(params, innerFeat, target_ppg,
                                          None, 0, 0)
    jax.block_until_ready((new_innerFeat, feat_slice, rppg))

    assert new_innerFeat.shape == (B, C_total, H, W)
    assert feat_slice.shape == (B, ncInput, H, W)
    assert rppg.shape == (B, 10, 1, 1)

    # correctness vs. pure-XLA reference (relaxed tolerance for bf16 MXU inputs)
    ref_new, ref_slice, ref_rppg = ppgnet_reference(raw, innerFeat, target_ppg,
                                                    ncInput)
    tol = 2e-2 if USE_BF16_MXU else 1e-4
    np.testing.assert_allclose(np.asarray(rppg), np.asarray(ref_rppg),
                               atol=tol, rtol=tol)
    np.testing.assert_allclose(np.asarray(new_innerFeat), np.asarray(ref_new))
    np.testing.assert_allclose(np.asarray(feat_slice), np.asarray(ref_slice))

    print("KERNEL_OK")
</pallas_src>

<mosaic_0001>
module attributes {stable_mosaic.version = 11 : i64} {
  func.func @kernel(%arg0: memref<200x36xbf16, #tpu.memory_space<vmem>>, %arg1: memref<36x128xbf16, #tpu.memory_space<vmem>>, %arg2: memref<9x128x64xbf16, #tpu.memory_space<vmem>>, %arg3: memref<9x64x32xbf16, #tpu.memory_space<vmem>>, %arg4: memref<72x84xbf16, #tpu.memory_space<vmem>>, %arg5: memref<1x1xf32, #tpu.memory_space<smem>>, %arg6: memref<128x128xbf16, #tpu.memory_space<vmem>>, %arg7: memref<1x128xf32, #tpu.memory_space<vmem>>, %arg8: memref<2x128xf32, #tpu.memory_space<vmem>>, %arg9: memref<200x128xf32, #tpu.memory_space<vmem>>, %arg10: memref<72x64xf32, #tpu.memory_space<vmem>>, %arg11: memref<2x128xf32, #tpu.memory_space<vmem>>) attributes {dimension_semantics = [], scalar_prefetch = 0 : i64, scratch_operands = 3 : i64, tpu.core_type = #tpu.core_type<tc>} {
    %c0 = arith.constant 0 : index
    %c0_0 = arith.constant 0 : index
    %0 = vector.load %arg0[%c0, %c0_0] : memref<200x36xbf16, #tpu.memory_space<vmem>>, vector<200x36xbf16>
    %c0_1 = arith.constant 0 : index
    %c0_2 = arith.constant 0 : index
    %1 = vector.load %arg1[%c0_1, %c0_2] : memref<36x128xbf16, #tpu.memory_space<vmem>>, vector<36x128xbf16>
    %cst = arith.constant dense<0.000000e+00> : vector<200x128xf32>
    %2 = tpu.matmul %0, %1, %cst {dimension_numbers = #tpu.dot_dimension_numbers<[1], [0], [0], [1], [0, 0, 1, 1], [], []>} : vector<200x36xbf16>, vector<36x128xbf16>, vector<200x128xf32> -> vector<200x128xf32>
    %c0_3 = arith.constant 0 : index
    %c0_4 = arith.constant 0 : index
    %3 = vector.load %arg9[%c0_3, %c0_4] : memref<200x128xf32, #tpu.memory_space<vmem>>, vector<200x128xf32>
    tpu.vector_store %arg9[%c0_3, %c0_4], %2 {strides = array<i32>} : memref<200x128xf32, #tpu.memory_space<vmem>>, vector<200x128xf32>,
    %c0_5 = arith.constant 0 : index
    %c0_6 = arith.constant 0 : index
    %4 = tpu.strided_load %arg9[%c0_5, %c0_6] {strides = array<i32: 2, 1>} : memref<200x128xf32, #tpu.memory_space<vmem>>, vector<84x128xf32>
    %5 = arith.truncf %4 : vector<84x128xf32> to vector<84x128xbf16>
    %c0_7 = arith.constant 0 : index
    %c0_8 = arith.constant 0 : index
    %c0_9 = arith.constant 0 : index
    %6 = vector.load %arg2[%c0_7, %c0_8, %c0_9] : memref<9x128x64xbf16, #tpu.memory_space<vmem>>, vector<1x128x64xbf16>
    %7 = vector.shape_cast %6 : vector<1x128x64xbf16> to vector<128x64xbf16>
    %cst_10 = arith.constant dense<0.000000e+00> : vector<84x64xf32>
    %8 = tpu.matmul %5, %7, %cst_10 {dimension_numbers = #tpu.dot_dimension_numbers<[1], [0], [0], [1], [0, 0, 1, 1], [], []>} : vector<84x128xbf16>, vector<128x64xbf16>, vector<84x64xf32> -> vector<84x64xf32>
    %c1 = arith.constant 1 : index
    %c0_11 = arith.constant 0 : index
    %9 = tpu.strided_load %arg9[%c1, %c0_11] {strides = array<i32: 2, 1>} : memref<200x128xf32, #tpu.memory_space<vmem>>, vector<84x128xf32>
    %10 = arith.truncf %9 : vector<84x128xf32> to vector<84x128xbf16>
    %c1_12 = arith.constant 1 : index
    %c0_13 = arith.constant 0 : index
    %c0_14 = arith.constant 0 : index
    %11 = vector.load %arg2[%c1_12, %c0_13, %c0_14] : memref<9x128x64xbf16, #tpu.memory_space<vmem>>, vector<1x128x64xbf16>
    %12 = vector.shape_cast %11 : vector<1x128x64xbf16> to vector<128x64xbf16>
    %cst_15 = arith.constant dense<0.000000e+00> : vector<84x64xf32>
    %13 = tpu.matmul %10, %12, %cst_15 {dimension_numbers = #tpu.dot_dimension_numbers<[1], [0], [0], [1], [0, 0, 1, 1], [], []>} : vector<84x128xbf16>, vector<128x64xbf16>, vector<84x64xf32> -> vector<84x64xf32>
    %14 = arith.addf %8, %13 : vector<84x64xf32>
    %c2 = arith.constant 2 : index
    %c0_16 = arith.constant 0 : index
    %15 = tpu.strided_load %arg9[%c2, %c0_16] {strides = array<i32: 2, 1>} : memref<200x128xf32, #tpu.memory_space<vmem>>, vector<84x128xf32>
    %16 = arith.truncf %15 : vector<84x128xf32> to vector<84x128xbf16>
    %c2_17 = arith.constant 2 : index
    %c0_18 = arith.constant 0 : index
    %c0_19 = arith.constant 0 : index
    %17 = vector.load %arg2[%c2_17, %c0_18, %c0_19] : memref<9x128x64xbf16, #tpu.memory_space<vmem>>, vector<1x128x64xbf16>
    %18 = vector.shape_cast %17 : vector<1x128x64xbf16> to vector<128x64xbf16>
    %cst_20 = arith.constant dense<0.000000e+00> : vector<84x64xf32>
    %19 = tpu.matmul %16, %18, %cst_20 {dimension_numbers = #tpu.dot_dimension_numbers<[1], [0], [0], [1], [0, 0, 1, 1], [], []>} : vector<84x128xbf16>, vector<128x64xbf16>, vector<84x64xf32> -> vector<84x64xf32>
    %20 = arith.addf %14, %19 : vector<84x64xf32>
    %c10 = arith.constant 10 : index
    %c0_21 = arith.constant 0 : index
    %21 = tpu.strided_load %arg9[%c10, %c0_21] {strides = array<i32: 2, 1>} : memref<200x128xf32, #tpu.memory_space<vmem>>, vector<84x128xf32>
    %22 = arith.truncf %21 : vector<84x128xf32> to vector<84x128xbf16>
    %c3 = arith.constant 3 : index
    %c0_22 = arith.constant 0 : index
    %c0_23 = arith.constant 0 : index
    %23 = vector.load %arg2[%c3, %c0_22, %c0_23] : memref<9x128x64xbf16, #tpu.memory_space<vmem>>, vector<1x128x64xbf16>
    %24 = vector.shape_cast %23 : vector<1x128x64xbf16> to vector<128x64xbf16>
    %cst_24 = arith.constant dense<0.000000e+00> : vector<84x64xf32>
    %25 = tpu.matmul %22, %24, %cst_24 {dimension_numbers = #tpu.dot_dimension_numbers<[1], [0], [0], [1], [0, 0, 1, 1], [], []>} : vector<84x128xbf16>, vector<128x64xbf16>, vector<84x64xf32> -> vector<84x64xf32>
    %26 = arith.addf %20, %25 : vector<84x64xf32>
    %c11 = arith.constant 11 : index
    %c0_25 = arith.constant 0 : index
    %27 = tpu.strided_load %arg9[%c11, %c0_25] {strides = array<i32: 2, 1>} : memref<200x128xf32, #tpu.memory_space<vmem>>, vector<84x128xf32>
    %28 = arith.truncf %27 : vector<84x128xf32> to vector<84x128xbf16>
    %c4 = arith.constant 4 : index
    %c0_26 = arith.constant 0 : index
    %c0_27 = arith.constant 0 : index
    %29 = vector.load %arg2[%c4, %c0_26, %c0_27] : memref<9x128x64xbf16, #tpu.memory_space<vmem>>, vector<1x128x64xbf16>
    %30 = vector.shape_cast %29 : vector<1x128x64xbf16> to vector<128x64xbf16>
    %cst_28 = arith.constant dense<0.000000e+00> : vector<84x64xf32>
    %31 = tpu.matmul %28, %30, %cst_28 {dimension_numbers = #tpu.dot_dimension_numbers<[1], [0], [0], [1], [0, 0, 1, 1], [], []>} : vector<84x128xbf16>, vector<128x64xbf16>, vector<84x64xf32> -> vector<84x64xf32>
    %32 = arith.addf %26, %31 : vector<84x64xf32>
    %c12 = arith.constant 12 : index
    %c0_29 = arith.constant 0 : index
    %33 = tpu.strided_load %arg9[%c12, %c0_29] {strides = array<i32: 2, 1>} : memref<200x128xf32, #tpu.memory_space<vmem>>, vector<84x128xf32>
    %34 = arith.truncf %33 : vector<84x128xf32> to vector<84x128xbf16>
    %c5 = arith.constant 5 : index
    %c0_30 = arith.constant 0 : index
    %c0_31 = arith.constant 0 : index
    %35 = vector.load %arg2[%c5, %c0_30, %c0_31] : memref<9x128x64xbf16, #tpu.memory_space<vmem>>, vector<1x128x64xbf16>
    %36 = vector.shape_cast %35 : vector<1x128x64xbf16> to vector<128x64xbf16>
    %cst_32 = arith.constant dense<0.000000e+00> : vector<84x64xf32>
    %37 = tpu.matmul %34, %36, %cst_32 {dimension_numbers = #tpu.dot_dimension_numbers<[1], [0], [0], [1], [0, 0, 1, 1], [], []>} : vector<84x128xbf16>, vector<128x64xbf16>, vector<84x64xf32> -> vector<84x64xf32>
    %38 = arith.addf %32, %37 : vector<84x64xf32>
    %c20 = arith.constant 20 : index
    %c0_33 = arith.constant 0 : index
    %39 = tpu.strided_load %arg9[%c20, %c0_33] {strides = array<i32: 2, 1>} : memref<200x128xf32, #tpu.memory_space<vmem>>, vector<84x128xf32>
    %40 = arith.truncf %39 : vector<84x128xf32> to vector<84x128xbf16>
    %c6 = arith.constant 6 : index
    %c0_34 = arith.constant 0 : index
    %c0_35 = arith.constant 0 : index
    %41 = vector.load %arg2[%c6, %c0_34, %c0_35] : memref<9x128x64xbf16, #tpu.memory_space<vmem>>, vector<1x128x64xbf16>
    %42 = vector.shape_cast %41 : vector<1x128x64xbf16> to vector<128x64xbf16>
    %cst_36 = arith.constant dense<0.000000e+00> : vector<84x64xf32>
    %43 = tpu.matmul %40, %42, %cst_36 {dimension_numbers = #tpu.dot_dimension_numbers<[1], [0], [0], [1], [0, 0, 1, 1], [], []>} : vector<84x128xbf16>, vector<128x64xbf16>, vector<84x64xf32> -> vector<84x64xf32>
    %44 = arith.addf %38, %43 : vector<84x64xf32>
    %c21 = arith.constant 21 : index
    %c0_37 = arith.constant 0 : index
    %45 = tpu.strided_load %arg9[%c21, %c0_37] {strides = array<i32: 2, 1>} : memref<200x128xf32, #tpu.memory_space<vmem>>, vector<84x128xf32>
    %46 = arith.truncf %45 : vector<84x128xf32> to vector<84x128xbf16>
    %c7 = arith.constant 7 : index
    %c0_38 = arith.constant 0 : index
    %c0_39 = arith.constant 0 : index
    %47 = vector.load %arg2[%c7, %c0_38, %c0_39] : memref<9x128x64xbf16, #tpu.memory_space<vmem>>, vector<1x128x64xbf16>
    %48 = vector.shape_cast %47 : vector<1x128x64xbf16> to vector<128x64xbf16>
    %cst_40 = arith.constant dense<0.000000e+00> : vector<84x64xf32>
    %49 = tpu.matmul %46, %48, %cst_40 {dimension_numbers = #tpu.dot_dimension_numbers<[1], [0], [0], [1], [0, 0, 1, 1], [], []>} : vector<84x128xbf16>, vector<128x64xbf16>, vector<84x64xf32> -> vector<84x64xf32>
    %50 = arith.addf %44, %49 : vector<84x64xf32>
    %c22 = arith.constant 22 : index
    %c0_41 = arith.constant 0 : index
    %51 = tpu.strided_load %arg9[%c22, %c0_41] {strides = array<i32: 2, 1>} : memref<200x128xf32, #tpu.memory_space<vmem>>, vector<84x128xf32>
    %52 = arith.truncf %51 : vector<84x128xf32> to vector<84x128xbf16>
    %c8 = arith.constant 8 : index
    %c0_42 = arith.constant 0 : index
    %c0_43 = arith.constant 0 : index
    %53 = vector.load %arg2[%c8, %c0_42, %c0_43] : memref<9x128x64xbf16, #tpu.memory_space<vmem>>, vector<1x128x64xbf16>
    %54 = vector.shape_cast %53 : vector<1x128x64xbf16> to vector<128x64xbf16>
    %cst_44 = arith.constant dense<0.000000e+00> : vector<84x64xf32>
    %55 = tpu.matmul %52, %54, %cst_44 {dimension_numbers = #tpu.dot_dimension_numbers<[1], [0], [0], [1], [0, 0, 1, 1], [], []>} : vector<84x128xbf16>, vector<128x64xbf16>, vector<84x64xf32> -> vector<84x64xf32>
    %56 = arith.addf %50, %55 : vector<84x64xf32>
    %c0_45 = arith.constant 0 : index
    %c0_46 = arith.constant 0 : index
    %57 = vector.load %arg4[%c0_45, %c0_46] : memref<72x84xbf16, #tpu.memory_space<vmem>>, vector<72x84xbf16>
    %58 = arith.truncf %56 : vector<84x64xf32> to vector<84x64xbf16>
    %cst_47 = arith.constant dense<0.000000e+00> : vector<72x64xf32>
    %59 = tpu.matmul %57, %58, %cst_47 {dimension_numbers = #tpu.dot_dimension_numbers<[1], [0], [0], [1], [0, 0, 1, 1], [], []>} : vector<72x84xbf16>, vector<84x64xbf16>, vector<72x64xf32> -> vector<72x64xf32>
    %c0_48 = arith.constant 0 : index
    %c0_49 = arith.constant 0 : index
    %60 = vector.load %arg10[%c0_48, %c0_49] : memref<72x64xf32, #tpu.memory_space<vmem>>, vector<72x64xf32>
    tpu.vector_store %arg10[%c0_48, %c0_49], %59 {strides = array<i32>} : memref<72x64xf32, #tpu.memory_space<vmem>>, vector<72x64xf32>,
    %c0_50 = arith.constant 0 : index
    %c0_51 = arith.constant 0 : index
    %61 = tpu.strided_load %arg10[%c0_50, %c0_51] {strides = array<i32: 2, 1>} : memref<72x64xf32, #tpu.memory_space<vmem>>, vector<26x64xf32>
    %62 = arith.truncf %61 : vector<26x64xf32> to vector<26x64xbf16>
    %c0_52 = arith.constant 0 : index
    %c0_53 = arith.constant 0 : index
    %c0_54 = arith.constant 0 : index
    %63 = vector.load %arg3[%c0_52, %c0_53, %c0_54] : memref<9x64x32xbf16, #tpu.memory_space<vmem>>, vector<1x64x32xbf16>
    %64 = vector.shape_cast %63 : vector<1x64x32xbf16> to vector<64x32xbf16>
    %cst_55 = arith.constant dense<0.000000e+00> : vector<26x32xf32>
    %65 = tpu.matmul %62, %64, %cst_55 {dimension_numbers = #tpu.dot_dimension_numbers<[1], [0], [0], [1], [0, 0, 1, 1], [], []>} : vector<26x64xbf16>, vector<64x32xbf16>, vector<26x32xf32> -> vector<26x32xf32>
    %c1_56 = arith.constant 1 : index
    %c0_57 = arith.constant 0 : index
    %66 = tpu.strided_load %arg10[%c1_56, %c0_57] {strides = array<i32: 2, 1>} : memref<72x64xf32, #tpu.memory_space<vmem>>, vector<26x64xf32>
    %67 = arith.truncf %66 : vector<26x64xf32> to vector<26x64xbf16>
    %c1_58 = arith.constant 1 : index
    %c0_59 = arith.constant 0 : index
    %c0_60 = arith.constant 0 : index
    %68 = vector.load %arg3[%c1_58, %c0_59, %c0_60] : memref<9x64x32xbf16, #tpu.memory_space<vmem>>, vector<1x64x32xbf16>
    %69 = vector.shape_cast %68 : vector<1x64x32xbf16> to vector<64x32xbf16>
    %cst_61 = arith.constant dense<0.000000e+00> : vector<26x32xf32>
    %70 = tpu.matmul %67, %69, %cst_61 {dimension_numbers = #tpu.dot_dimension_numbers<[1], [0], [0], [1], [0, 0, 1, 1], [], []>} : vector<26x64xbf16>, vector<64x32xbf16>, vector<26x32xf32> -> vector<26x32xf32>
    %71 = arith.addf %65, %70 : vector<26x32xf32>
    %c2_62 = arith.constant 2 : index
    %c0_63 = arith.constant 0 : index
    %72 = tpu.strided_load %arg10[%c2_62, %c0_63] {strides = array<i32: 2, 1>} : memref<72x64xf32, #tpu.memory_space<vmem>>, vector<26x64xf32>
    %73 = arith.truncf %72 : vector<26x64xf32> to vector<26x64xbf16>
    %c2_64 = arith.constant 2 : index
    %c0_65 = arith.constant 0 : index
    %c0_66 = arith.constant 0 : index
    %74 = vector.load %arg3[%c2_64, %c0_65, %c0_66] : memref<9x64x32xbf16, #tpu.memory_space<vmem>>, vector<1x64x32xbf16>
    %75 = vector.shape_cast %74 : vector<1x64x32xbf16> to vector<64x32xbf16>
    %cst_67 = arith.constant dense<0.000000e+00> : vector<26x32xf32>
    %76 = tpu.matmul %73, %75, %cst_67 {dimension_numbers = #tpu.dot_dimension_numbers<[1], [0], [0], [1], [0, 0, 1, 1], [], []>} : vector<26x64xbf16>, vector<64x32xbf16>, vector<26x32xf32> -> vector<26x32xf32>
    %77 = arith.addf %71, %76 : vector<26x32xf32>
    %c6_68 = arith.constant 6 : index
    %c0_69 = arith.constant 0 : index
    %78 = tpu.strided_load %arg10[%c6_68, %c0_69] {strides = array<i32: 2, 1>} : memref<72x64xf32, #tpu.memory_space<vmem>>, vector<26x64xf32>
    %79 = arith.truncf %78 : vector<26x64xf32> to vector<26x64xbf16>
    %c3_70 = arith.constant 3 : index
    %c0_71 = arith.constant 0 : index
    %c0_72 = arith.constant 0 : index
    %80 = vector.load %arg3[%c3_70, %c0_71, %c0_72] : memref<9x64x32xbf16, #tpu.memory_space<vmem>>, vector<1x64x32xbf16>
    %81 = vector.shape_cast %80 : vector<1x64x32xbf16> to vector<64x32xbf16>
    %cst_73 = arith.constant dense<0.000000e+00> : vector<26x32xf32>
    %82 = tpu.matmul %79, %81, %cst_73 {dimension_numbers = #tpu.dot_dimension_numbers<[1], [0], [0], [1], [0, 0, 1, 1], [], []>} : vector<26x64xbf16>, vector<64x32xbf16>, vector<26x32xf32> -> vector<26x32xf32>
    %83 = arith.addf %77, %82 : vector<26x32xf32>
    %c7_74 = arith.constant 7 : index
    %c0_75 = arith.constant 0 : index
    %84 = tpu.strided_load %arg10[%c7_74, %c0_75] {strides = array<i32: 2, 1>} : memref<72x64xf32, #tpu.memory_space<vmem>>, vector<26x64xf32>
    %85 = arith.truncf %84 : vector<26x64xf32> to vector<26x64xbf16>
    %c4_76 = arith.constant 4 : index
    %c0_77 = arith.constant 0 : index
    %c0_78 = arith.constant 0 : index
    %86 = vector.load %arg3[%c4_76, %c0_77, %c0_78] : memref<9x64x32xbf16, #tpu.memory_space<vmem>>, vector<1x64x32xbf16>
    %87 = vector.shape_cast %86 : vector<1x64x32xbf16> to vector<64x32xbf16>
    %cst_79 = arith.constant dense<0.000000e+00> : vector<26x32xf32>
    %88 = tpu.matmul %85, %87, %cst_79 {dimension_numbers = #tpu.dot_dimension_numbers<[1], [0], [0], [1], [0, 0, 1, 1], [], []>} : vector<26x64xbf16>, vector<64x32xbf16>, vector<26x32xf32> -> vector<26x32xf32>
    %89 = arith.addf %83, %88 : vector<26x32xf32>
    %c8_80 = arith.constant 8 : index
    %c0_81 = arith.constant 0 : index
    %90 = tpu.strided_load %arg10[%c8_80, %c0_81] {strides = array<i32: 2, 1>} : memref<72x64xf32, #tpu.memory_space<vmem>>, vector<26x64xf32>
    %91 = arith.truncf %90 : vector<26x64xf32> to vector<26x64xbf16>
    %c5_82 = arith.constant 5 : index
    %c0_83 = arith.constant 0 : index
    %c0_84 = arith.constant 0 : index
    %92 = vector.load %arg3[%c5_82, %c0_83, %c0_84] : memref<9x64x32xbf16, #tpu.memory_space<vmem>>, vector<1x64x32xbf16>
    %93 = vector.shape_cast %92 : vector<1x64x32xbf16> to vector<64x32xbf16>
    %cst_85 = arith.constant dense<0.000000e+00> : vector<26x32xf32>
    %94 = tpu.matmul %91, %93, %cst_85 {dimension_numbers = #tpu.dot_dimension_numbers<[1], [0], [0], [1], [0, 0, 1, 1], [], []>} : vector<26x64xbf16>, vector<64x32xbf16>, vector<26x32xf32> -> vector<26x32xf32>
    %95 = arith.addf %89, %94 : vector<26x32xf32>
    %c12_86 = arith.constant 12 : index
    %c0_87 = arith.constant 0 : index
    %96 = tpu.strided_load %arg10[%c12_86, %c0_87] {strides = array<i32: 2, 1>} : memref<72x64xf32, #tpu.memory_space<vmem>>, vector<26x64xf32>
    %97 = arith.truncf %96 : vector<26x64xf32> to vector<26x64xbf16>
    %c6_88 = arith.constant 6 : index
    %c0_89 = arith.constant 0 : index
    %c0_90 = arith.constant 0 : index
    %98 = vector.load %arg3[%c6_88, %c0_89, %c0_90] : memref<9x64x32xbf16, #tpu.memory_space<vmem>>, vector<1x64x32xbf16>
    %99 = vector.shape_cast %98 : vector<1x64x32xbf16> to vector<64x32xbf16>
    %cst_91 = arith.constant dense<0.000000e+00> : vector<26x32xf32>
    %100 = tpu.matmul %97, %99, %cst_91 {dimension_numbers = #tpu.dot_dimension_numbers<[1], [0], [0], [1], [0, 0, 1, 1], [], []>} : vector<26x64xbf16>, vector<64x32xbf16>, vector<26x32xf32> -> vector<26x32xf32>
    %101 = arith.addf %95, %100 : vector<26x32xf32>
    %c13 = arith.constant 13 : index
    %c0_92 = arith.constant 0 : index
    %102 = tpu.strided_load %arg10[%c13, %c0_92] {strides = array<i32: 2, 1>} : memref<72x64xf32, #tpu.memory_space<vmem>>, vector<26x64xf32>
    %103 = arith.truncf %102 : vector<26x64xf32> to vector<26x64xbf16>
    %c7_93 = arith.constant 7 : index
    %c0_94 = arith.constant 0 : index
    %c0_95 = arith.constant 0 : index
    %104 = vector.load %arg3[%c7_93, %c0_94, %c0_95] : memref<9x64x32xbf16, #tpu.memory_space<vmem>>, vector<1x64x32xbf16>
    %105 = vector.shape_cast %104 : vector<1x64x32xbf16> to vector<64x32xbf16>
    %cst_96 = arith.constant dense<0.000000e+00> : vector<26x32xf32>
    %106 = tpu.matmul %103, %105, %cst_96 {dimension_numbers = #tpu.dot_dimension_numbers<[1], [0], [0], [1], [0, 0, 1, 1], [], []>} : vector<26x64xbf16>, vector<64x32xbf16>, vector<26x32xf32> -> vector<26x32xf32>
    %107 = arith.addf %101, %106 : vector<26x32xf32>
    %c14 = arith.constant 14 : index
    %c0_97 = arith.constant 0 : index
    %108 = tpu.strided_load %arg10[%c14, %c0_97] {strides = array<i32: 2, 1>} : memref<72x64xf32, #tpu.memory_space<vmem>>, vector<26x64xf32>
    %109 = arith.truncf %108 : vector<26x64xf32> to vector<26x64xbf16>
    %c8_98 = arith.constant 8 : index
    %c0_99 = arith.constant 0 : index
    %c0_100 = arith.constant 0 : index
    %110 = vector.load %arg3[%c8_98, %c0_99, %c0_100] : memref<9x64x32xbf16, #tpu.memory_space<vmem>>, vector<1x64x32xbf16>
    %111 = vector.shape_cast %110 : vector<1x64x32xbf16> to vector<64x32xbf16>
    %cst_101 = arith.constant dense<0.000000e+00> : vector<26x32xf32>
    %112 = tpu.matmul %109, %111, %cst_101 {dimension_numbers = #tpu.dot_dimension_numbers<[1], [0], [0], [1], [0, 0, 1, 1], [], []>} : vector<26x64xbf16>, vector<64x32xbf16>, vector<26x32xf32> -> vector<26x32xf32>
    %113 = arith.addf %107, %112 : vector<26x32xf32>
    %c0_102 = arith.constant 0 : index
    %c0_103 = arith.constant 0 : index
    %114 = memref.load %arg5[%c0_102, %c0_103] : memref<1x1xf32, #tpu.memory_space<smem>>
    %cst_104 = arith.constant 0.000000e+00 : f32
    %115 = vector.broadcast %cst_104 : f32 to vector<26x32xf32>
    %116 = arith.cmpf ogt, %113, %115 : vector<26x32xf32>
    %117 = vector.broadcast %114 : f32 to vector<26x32xf32>
    %118 = arith.mulf %117, %113 : vector<26x32xf32>
    %119 = arith.select %116, %113, %118 : vector<26x32xi1>, vector<26x32xf32>
    %120 = vector.extract_strided_slice %119 {offsets = [0, 0], sizes = [1, 32], strides = [1, 1]} : vector<26x32xf32> to vector<1x32xf32>
    %c0_105 = arith.constant 0 : index
    %c0_106 = arith.constant 0 : index
    %121 = vector.load %arg11[%c0_105, %c0_106] : memref<2x128xf32, #tpu.memory_space<vmem>>, vector<1x32xf32>
    tpu.vector_store %arg11[%c0_105, %c0_106], %120 {strides = array<i32>} : memref<2x128xf32, #tpu.memory_space<vmem>>, vector<1x32xf32>,
    %122 = vector.extract_strided_slice %119 {offsets = [1, 0], sizes = [1, 32], strides = [1, 1]} : vector<26x32xf32> to vector<1x32xf32>
    %c0_107 = arith.constant 0 : index
    %c32 = arith.constant 32 : index
    %123 = vector.load %arg11[%c0_107, %c32] : memref<2x128xf32, #tpu.memory_space<vmem>>, vector<1x32xf32>
    tpu.vector_store %arg11[%c0_107, %c32], %122 {strides = array<i32>} : memref<2x128xf32, #tpu.memory_space<vmem>>, vector<1x32xf32>,
    %124 = vector.extract_strided_slice %119 {offsets = [6, 0], sizes = [1, 32], strides = [1, 1]} : vector<26x32xf32> to vector<1x32xf32>
    %c0_108 = arith.constant 0 : index
    %c64 = arith.constant 64 : index
    %125 = vector.load %arg11[%c0_108, %c64] : memref<2x128xf32, #tpu.memory_space<vmem>>, vector<1x32xf32>
    tpu.vector_store %arg11[%c0_108, %c64], %124 {strides = array<i32>} : memref<2x128xf32, #tpu.memory_space<vmem>>, vector<1x32xf32>,
    %126 = vector.extract_strided_slice %119 {offsets = [7, 0], sizes = [1, 32], strides = [1, 1]} : vector<26x32xf32> to vector<1x32xf32>
    %c0_109 = arith.constant 0 : index
    %c96 = arith.constant 96 : index
    %127 = vector.load %arg11[%c0_109, %c96] : memref<2x128xf32, #tpu.memory_space<vmem>>, vector<1x32xf32>
    tpu.vector_store %arg11[%c0_109, %c96], %126 {strides = array<i32>} : memref<2x128xf32, #tpu.memory_space<vmem>>, vector<1x32xf32>,
    %128 = vector.extract_strided_slice %119 {offsets = [18, 0], sizes = [1, 32], strides = [1, 1]} : vector<26x32xf32> to vector<1x32xf32>
    %c1_110 = arith.constant 1 : index
    %c0_111 = arith.constant 0 : index
    %129 = vector.load %arg11[%c1_110, %c0_111] : memref<2x128xf32, #tpu.memory_space<vmem>>, vector<1x32xf32>
    tpu.vector_store %arg11[%c1_110, %c0_111], %128 {strides = array<i32>} : memref<2x128xf32, #tpu.memory_space<vmem>>, vector<1x32xf32>,
    %130 = vector.extract_strided_slice %119 {offsets = [19, 0], sizes = [1, 32], strides = [1, 1]} : vector<26x32xf32> to vector<1x32xf32>
    %c1_112 = arith.constant 1 : index
    %c32_113 = arith.constant 32 : index
    %131 = vector.load %arg11[%c1_112, %c32_113] : memref<2x128xf32, #tpu.memory_space<vmem>>, vector<1x32xf32>
    tpu.vector_store %arg11[%c1_112, %c32_113], %130 {strides = array<i32>} : memref<2x128xf32, #tpu.memory_space<vmem>>, vector<1x32xf32>,
    %132 = vector.extract_strided_slice %119 {offsets = [24, 0], sizes = [1, 32], strides = [1, 1]} : vector<26x32xf32> to vector<1x32xf32>
    %c1_114 = arith.constant 1 : index
    %c64_115 = arith.constant 64 : index
    %133 = vector.load %arg11[%c1_114, %c64_115] : memref<2x128xf32, #tpu.memory_space<vmem>>, vector<1x32xf32>
    tpu.vector_store %arg11[%c1_114, %c64_115], %132 {strides = array<i32>} : memref<2x128xf32, #tpu.memory_space<vmem>>, vector<1x32xf32>,
    %134 = vector.extract_strided_slice %119 {offsets = [25, 0], sizes = [1, 32], strides = [1, 1]} : vector<26x32xf32> to vector<1x32xf32>
    %c1_116 = arith.constant 1 : index
    %c96_117 = arith.constant 96 : index
    %135 = vector.load %arg11[%c1_116, %c96_117] : memref<2x128xf32, #tpu.memory_space<vmem>>, vector<1x32xf32>
    tpu.vector_store %arg11[%c1_116, %c96_117], %134 {strides = array<i32>} : memref<2x128xf32, #tpu.memory_space<vmem>>, vector<1x32xf32>,
    %c0_118 = arith.constant 0 : index
    %c0_119 = arith.constant 0 : index
    %136 = vector.load %arg11[%c0_118, %c0_119] : memref<2x128xf32, #tpu.memory_space<vmem>>, vector<2x128xf32>
    %137 = arith.truncf %136 : vector<2x128xf32> to vector<2x128xbf16>
    %c0_120 = arith.constant 0 : index
    %c0_121 = arith.constant 0 : index
    %138 = vector.load %arg6[%c0_120, %c0_121] : memref<128x128xbf16, #tpu.memory_space<vmem>>, vector<128x128xbf16>
    %cst_122 = arith.constant dense<0.000000e+00> : vector<2x128xf32>
    %139 = tpu.matmul %137, %138, %cst_122 {dimension_numbers = #tpu.dot_dimension_numbers<[1], [0], [0], [1], [0, 0, 1, 1], [], []>} : vector<2x128xbf16>, vector<128x128xbf16>, vector<2x128xf32> -> vector<2x128xf32>
    %c0_123 = arith.constant 0 : index
    %c0_124 = arith.constant 0 : index
    %140 = vector.load %arg7[%c0_123, %c0_124] : memref<1x128xf32, #tpu.memory_space<vmem>>, vector<1x128xf32>
    %141 = vector.broadcast %140 : vector<1x128xf32> to vector<2x128xf32>
    %142 = arith.addf %139, %141 : vector<2x128xf32>
    %c0_125 = arith.constant 0 : index
    %c0_126 = arith.constant 0 : index
    %143 = vector.load %arg8[%c0_125, %c0_126] : memref<2x128xf32, #tpu.memory_space<vmem>>, vector<2x128xf32>
    tpu.vector_store %arg8[%c0_125, %c0_126], %142 {strides = array<i32>} : memref<2x128xf32, #tpu.memory_space<vmem>>, vector<2x128xf32>,
    return
  }
}

</mosaic_0001>

<bundles_post_ra>
// kernel: ppgnet_forward.1
= control target key start
LH: loop header
LB: loop body
LE: loop exit
PB: predicated region body
PF: predicated region fallthrough
CT: control target
= control target key end

     0   :  { %vm180_vm0 = vcmask 1041408   ;;  %s3994_s0 = inlined_call_operand.vmem [shape: bf16[200,36], index: 0, kind: input, shape index: {}]   ;;  %s3995_s1 = inlined_call_operand.vmem [shape: bf16[36,128], index: 1, kind: input, shape index: {}]   ;;  %s3996_s2 = inlined_call_operand.vmem [shape: bf16[9,128,64], index: 2, kind: input, shape index: {}]   ;;  %s3997_s3 = inlined_call_operand.vmem [shape: bf16[9,64,32], index: 3, kind: input, shape index: {}]   ;;  %s3998_s4 = inlined_call_operand.vmem [shape: bf16[72,84], index: 4, kind: input, shape index: {}]   ;;  %s3999_s5 = inlined_call_operand.<no memory space> [shape: f32[1,1], index: 5, kind: input, shape index: {}]   ;;  %s4000_s6 = inlined_call_operand.vmem [shape: bf16[128,128], index: 6, kind: input, shape index: {}]   ;;  %s4001_s7 = inlined_call_operand.vmem [shape: f32[1,128], index: 7, kind: input, shape index: {}]   ;;  %s4002_s8 = inlined_call_operand.hbm [shape: f32[2,128], index: 8, kind: output, shape index: {}]  }
   0x1   :  { %v61_v0 = vld [vmem:[%s3995_s1 + $0x10] sm:$0x3] }
   0x2   :  { %v134_v1 = vunpack.c.l.b16 %v61_v0 }
   0x3   :  { %14 = vsyncpa [#allocation7], 0  ;;  %v3183_v4 = vld [vmem:[%s3995_s1 + $0x8] sm:$0xff]  ;;  %v3182_v5 = vld [vmem:[%s3995_s1] sm:$0xff]  ;;  %vm140_vm1 = vcmask 293888   ;;  %vm1574_vm2 = vcmask 687104  }
   0x4   :  { %v137_v2 = vpack.c.b16 %v134_v1, %v134_v1  ;;  %v3170_v6 = vld [vmem:[%s3994_s0] sm:$0xff]  ;;  %v3171_v7 = vld [vmem:[%s3994_s0 + $0x8] sm:$0xff]  ;;  %v3172_v8 = vld [vmem:[%s3994_s0 + $0x10] sm:$0xff]  ;;  %vm1626_vm3 = vcmask 523264   ;;  %vm2269_vm5 = vcmask 253952   ;;  %s3335_s19 = smov 96  }
   0x5   :  { %v3173_v9 = vld [vmem:[%s3994_s0 + $0x18] sm:$0xff]  ;;  %v3174_v10 = vld [vmem:[%s3994_s0 + $0x20] sm:$0xff]  ;;  %v3175_v11 = vld [vmem:[%s3994_s0 + $0x28] sm:$0xff]  ;;  %s3336_s20 = smov 64   ;;  %s3337_s21 = smov 32   ;;  %vm2287_vm7 = vcmask 256002  }
   0x6   :  { %v182_v3 = vsel %vm180_vm0, %v137_v2, 0  ;;  %v3176_v12 = vld [vmem:[%s3994_s0 + $0x30] sm:$0xff]  ;;  %v3199_v13 = vld [vmem:[%s3996_s2 + $0x78] sm:$0xff]  ;;  %v3197_v17 = vld [vmem:[%s3996_s2 + $0x68] sm:$0xff]  ;;  %vm2275_vm9 = vcmask 517377   ;;  %vm2280_vm10 = vcmask 784902  }
   0x7   :  { %189 = vmatpush.bf16.msra.mxu0 %v182_v3  ;;  %v3191_v14 = vld [vmem:[%s3996_s2 + $0x38] sm:$0xff]  ;;  %418 = vmatpush.bf16.msra.mxu1 %v3199_v13  ;;  %v3198_v15 = vld [vmem:[%s3996_s2 + $0x70] sm:$0xff]  ;;  %v3189_v18 = vld [vmem:[%s3996_s2 + $0x28] sm:$0xff]  ;;  %vm2285_vm11 = vcmask 1048327   ;;  %vm2293_vm12 = vcmask 519427   ;;  %vm2299_vm13 = vcmask 778752  }
   0x8   :  { %504 = vmatpush.bf16.msra.mxu2 %v3191_v14  ;;  %v3190_v16 = vld [vmem:[%s3996_s2 + $0x30] sm:$0xff]  ;;  %v3207_v19 = vld [vmem:[%s3996_s2 + $0xb8] sm:$0xff]  ;;  %v3196_v20 = vld [vmem:[%s3996_s2 + $0x60] sm:$0xff]  ;;  %vm2304_vm14 = vcmask 1042177   ;;  %s3338_s14 = smov [#allocation6]   ;;  %s2397_s1 = sshll.u32 %s4002_s8, 4  ;;  %s2398_s1 = int_to_ptr.hbm [resolvable:$true] %s2397_s1 }
   0x9   :  { %635 = vmatpush.bf16.msra.mxu3 %v3207_v19  ;;  %v3188_v21 = vld [vmem:[%s3996_s2 + $0x20] sm:$0xff]  ;;  %v3206_v22 = vld [vmem:[%s3996_s2 + $0xb0] sm:$0xff]  ;;  %v3177_v23 = vld [vmem:[%s3994_s0 + $0x38] sm:$0xff]  ;;  %s2395_s15 = sshll.u32 %s3338_s14, 4  ;;  %s2396_s15 = int_to_ptr.vmem [resolvable:$true] %s2395_s15 }
   0xa   :  { %v3195_v24 = vld [vmem:[%s3996_s2 + $0x58] sm:$0xff]  ;;  %v3205_v26 = vld [vmem:[%s3996_s2 + $0xa8] sm:$0xff]  ;;  %v3194_v27 = vld [vmem:[%s3996_s2 + $0x50] sm:$0xff] }
   0xb   :  { %190 = vmatpush.bf16.msra.mxu0 %v3183_v4  ;;  %419 = vmatpush.bf16.msra.mxu1 %v3198_v15  ;;  %v3187_v25 = vld [vmem:[%s3996_s2 + $0x18] sm:$0xff]  ;;  %v3186_v28 = vld [vmem:[%s3996_s2 + $0x10] sm:$0xff]  ;;  %v3204_v29 = vld [vmem:[%s3996_s2 + $0xa0] sm:$0xff] }
   0xc   :  { %505 = vmatpush.bf16.msra.mxu2 %v3190_v16  ;;  %v3193_v30 = vld [vmem:[%s3996_s2 + $0x48] sm:$0xff]  ;;  %v3203_v32 = vld [vmem:[%s3996_s2 + $0x98] sm:$0xff]  ;;  %v3192_v33 = vld [vmem:[%s3996_s2 + $0x40] sm:$0xff] }
   0xd   :  { %636 = vmatpush.bf16.msra.mxu3 %v3206_v22  ;;  %v3185_v31 = vld [vmem:[%s3996_s2 + $0x8] sm:$0xff]  ;;  %v3184_v34 = vld [vmem:[%s3996_s2] sm:$0xff]  ;;  %v3202_v35 = vld [vmem:[%s3996_s2 + $0x90] sm:$0xff] }
   0xe   :  { %v3178_v36 = vld [vmem:[%s3994_s0 + $0x40] sm:$0xff]  ;;  %v3201_v38 = vld [vmem:[%s3996_s2 + $0x88] sm:$0xff]  ;;  %v3239_v43 = vld [vmem:[%s3996_s2 + $0x1b8] sm:$0xff] }
   0xf   :  { %191 = vmatpush.bf16.msra.mxu0 %v3182_v5  ;;  %420 = vmatpush.bf16.msra.mxu1 %v3197_v17  ;;  %v3200_v39 = vld [vmem:[%s3996_s2 + $0x80] sm:$0xff]  ;;  %v3179_v41 = vld [vmem:[%s3994_s0 + $0x48] sm:$0xff]  ;;  %v3238_v44 = vld [vmem:[%s3996_s2 + $0x1b0] sm:$0xff] }
  0x10   :  { %506 = vmatpush.bf16.msra.mxu2 %v3189_v18  ;;  %v3237_v46 = vld [vmem:[%s3996_s2 + $0x1a8] sm:$0xff]  ;;  %v3180_v47 = vld [vmem:[%s3994_s0 + $0x50] sm:$0xff]  ;;  %v3236_v49 = vld [vmem:[%s3996_s2 + $0x1a0] sm:$0xff] }
  0x11   :  { %637 = vmatpush.bf16.msra.mxu3 %v3205_v26  ;;  %v3235_v56 = vld [vmem:[%s3996_s2 + $0x198] sm:$0xff]  ;;  %v3234_v57 = vld [vmem:[%s3996_s2 + $0x190] sm:$0xff]  ;;  %v3233_v62 = vld [vmem:[%s3996_s2 + $0x188] sm:$0xff] }
  0x12   :  { %2462 = vmatmul.msk.bf16.vlgmr.msra.gmra.mxu0 %vm140_vm1, %v3170_v6  ;;  %v3181_v63 = vld [vmem:[%s3994_s0 + $0x58] sm:$0xff]  ;;  %v3232_v0 = vld [vmem:[%s3996_s2 + $0x180] sm:$0xff] }
  0x13   :  { %421 = vmatpush.bf16.msra.mxu1 %v3196_v20  ;;  %1203 = vmatpush.bf16.msrb.mxu0 %v3239_v43  ;;  %v56_v3 = vld [vmem:[%s3994_s0 + $0x60] sm:$0xf] }
  0x14   :  { %507 = vmatpush.bf16.msra.mxu2 %v3188_v21  ;;  %v111_v4 = vunpack.c.l.b16 %v56_v3  ;;  %v3218_v3 = vld [vmem:[%s3996_s2 + $0x110] sm:$0xff] }
  0x15   :  { %638 = vmatpush.bf16.msra.mxu3 %v3204_v29 }
  0x16   :  { %v124_v5 = vpack.c.b16 %v111_v4, %v111_v4  ;;  %v3228_v4 = vld [vmem:[%s3996_s2 + $0x160] sm:$0xff] }
  0x17   :  { %422 = vmatpush.bf16.msra.mxu1 %v3195_v24  ;;  %1204 = vmatpush.bf16.msrb.mxu0 %v3238_v44 }
  0x18   :  { %508 = vmatpush.bf16.msra.mxu2 %v3187_v25 }
  0x19   :  { %639 = vmatpush.bf16.msra.mxu3 %v3203_v32 }
  0x1b   :  { %423 = vmatpush.bf16.msra.mxu1 %v3194_v27  ;;  %1205 = vmatpush.bf16.msrb.mxu0 %v3237_v46 }
  0x1c   :  { %509 = vmatpush.bf16.msra.mxu2 %v3186_v28 }
  0x1d   :  { %640 = vmatpush.bf16.msra.mxu3 %v3202_v35 }
  0x1f   :  { %424 = vmatpush.bf16.msra.mxu1 %v3193_v30  ;;  %1206 = vmatpush.bf16.msrb.mxu0 %v3236_v49  ;;  %v3223_v49 = vld [vmem:[%s3996_s2 + $0x138] sm:$0xff] }
  0x20   :  { %510 = vmatpush.bf16.msra.mxu2 %v3185_v31 }
  0x21   :  { %641 = vmatpush.bf16.msra.mxu3 %v3201_v38 }
  0x22   :  { %2463 = vmatmul.msk.bf16.gmra.mxu0 %vm140_vm1, %v3171_v7 }
  0x23   :  { %425 = vmatpush.bf16.msra.mxu1 %v3192_v33  ;;  %1207 = vmatpush.bf16.msrb.mxu0 %v3235_v56  ;;  %v3213_v56 = vld [vmem:[%s3996_s2 + $0xe8] sm:$0xff] }
  0x24   :  { %511 = vmatpush.bf16.msra.mxu2 %v3184_v34 }
  0x25   :  { %642 = vmatpush.bf16.msra.mxu3 %v3200_v39 }
  0x27   :  { %1208 = vmatpush.bf16.msrb.mxu0 %v3234_v57  ;;  %v3221_v57 = vld [vmem:[%s3996_s2 + $0x128] sm:$0xff] }
  0x28   :  { %919 = vmatpush.bf16.msrb.mxu2 %v3223_v49 }
  0x2b   :  { %1209 = vmatpush.bf16.msrb.mxu0 %v3233_v62 }
  0x2f   :  { %1210 = vmatpush.bf16.msrb.mxu0 %v3232_v0  ;;  %v3219_v0 = vld [vmem:[%s3996_s2 + $0x118] sm:$0xff] }
  0x32   :  { %2464 = vmatmul.msk.bf16.gmra.mxu0 %vm140_vm1, %v3172_v8 }
  0x42   :  { %2465 = vmatmul.msk.bf16.gmra.mxu0 %vm140_vm1, %v3173_v9 }
  0x52   :  { %2466 = vmatmul.msk.bf16.gmra.mxu0 %vm140_vm1, %v3174_v10 }
  0x62   :  { %2467 = vmatmul.msk.bf16.gmra.mxu0 %vm140_vm1, %v3175_v11 }
  0x72   :  { %2468 = vmatmul.msk.bf16.gmra.mxu0 %vm140_vm1, %v3176_v12 }
  0x82   :  { %2469 = vmatmul.msk.bf16.gmra.mxu0 %vm140_vm1, %v3177_v23 }
  0x8f   :  { %v193_v37 = vpop.f32.mrf.mxu0 }
  0x90   :  { %257 = vst [vmem:[#allocation2] sm:$0xff] %v193_v37 }
  0x92   :  { %2470 = vmatmul.msk.bf16.gmra.mxu0 %vm140_vm1, %v3178_v36 }
  0x97   :  { %v195_v40 = vpop.f32.mrf.mxu0 }
  0x98   :  { %258 = vst [vmem:[#allocation2 + $0x8] sm:$0xff] %v195_v40 }
  0x9f   :  { %v198_v42 = vpop.f32.mrf.mxu0  ;;  %v326_v48 = vld [vmem:[#allocation2 + $0x1] ss:$2 sm:$0xff]  ;;  %v282_v52 = vld [vmem:[#allocation2] ss:$2 sm:$0xff] }
  0xa0   :  { %259 = vst [vmem:[#allocation2 + $0x10] sm:$0xff] %v198_v42 }
  0xa2   :  { %2471 = vmatmul.msk.bf16.gmra.mxu0 %vm140_vm1, %v3179_v41 }
  0xa7   :  { %v200_v45 = vpop.f32.mrf.mxu0  ;;  %v543_v59 = vld [vmem:[#allocation2 + $0x2] ss:$2 sm:$0xff] }
  0xa8   :  { %260 = vst [vmem:[#allocation2 + $0x18] sm:$0xff] %v200_v45 }
  0xaf   :  { %v203_v50 = vpop.f32.mrf.mxu0  ;;  %v328_v51 = vld [vmem:[#allocation2 + $0x11] ss:$2 sm:$0xff]  ;;  %v284_v53 = vld [vmem:[#allocation2 + $0x10] ss:$2 sm:$0xff] }
  0xb0   :  { %261 = vst [vmem:[#allocation2 + $0x20] sm:$0xff] %v203_v50  ;;  %v347_v54 = vpack.c.bf16 %v328_v51, %v326_v48  ;;  %v303_v55 = vpack.c.bf16 %v284_v53, %v282_v52  ;;  %v3215_v48 = vld [vmem:[%s3996_s2 + $0xf8] sm:$0xff]  ;;  %v3214_v50 = vld [vmem:[%s3996_s2 + $0xf0] sm:$0xff] }
  0xb1   :  { %777 = vmatpush.bf16.msrb.mxu1 %v3215_v48  ;;  %v3222_v51 = vld [vmem:[%s3996_s2 + $0x130] sm:$0xff] }
  0xb2   :  { %2472 = vmatmul.msk.bf16.gmra.mxu0 %vm140_vm1, %v3180_v47  ;;  %426 = vmatmul.bf16.vlgmr.msra.gmra.mxu1 %v347_v54  ;;  %v685_v49 = vld [vmem:[#allocation2 + $0xa] ss:$2 sm:$0xff] }
  0xb3   :  { %512 = vmatmul.bf16.vlgmr.msra.gmra.mxu2 %v303_v55 }
  0xb4   :  { %920 = vmatpush.bf16.msrb.mxu2 %v3222_v51 }
  0xb5   :  { %778 = vmatpush.bf16.msrb.mxu1 %v3214_v50  ;;  %v827_v50 = vld [vmem:[#allocation2 + $0xb] ss:$2 sm:$0xff] }
  0xb7   :  { %v205_v58 = vpop.f32.mrf.mxu0  ;;  %v545_v60 = vld [vmem:[#allocation2 + $0x12] ss:$2 sm:$0xff] }
  0xb8   :  { %262 = vst [vmem:[#allocation2 + $0x28] sm:$0xff] %v205_v58  ;;  %v564_v61 = vpack.c.bf16 %v545_v60, %v543_v59  ;;  %v1111_v19 = vld [vmem:[#allocation2 + $0x14] ss:$2 sm:$0xff]  ;;  %921 = vmatpush.bf16.msrb.mxu2 %v3221_v57 }
  0xb9   :  { %v3231_v58 = vld [vmem:[%s3996_s2 + $0x178] sm:$0xff]  ;;  %779 = vmatpush.bf16.msrb.mxu1 %v3213_v56  ;;  %v3212_v59 = vld [vmem:[%s3996_s2 + $0xe0] sm:$0xff] }
  0xba   :  { %643 = vmatmul.bf16.vlgmr.msra.gmra.mxu3 %v564_v61  ;;  %v3220_v60 = vld [vmem:[%s3996_s2 + $0x120] sm:$0xff]  ;;  %v3230_v61 = vld [vmem:[%s3996_s2 + $0x170] sm:$0xff] }
  0xbb   :  { %1061 = vmatpush.bf16.msrb.mxu3 %v3231_v58 }
  0xbc   :  { %922 = vmatpush.bf16.msrb.mxu2 %v3220_v60 }
  0xbd   :  { %780 = vmatpush.bf16.msrb.mxu1 %v3212_v59  ;;  %v969_v59 = vld [vmem:[#allocation2 + $0xc] ss:$2 sm:$0xff] }
  0xbf   :  { %v208_v1 = vpop.f32.mrf.mxu0  ;;  %v330_v6 = vld [vmem:[#allocation2 + $0x21] ss:$2 sm:$0xff]  ;;  %v286_v9 = vld [vmem:[#allocation2 + $0x20] ss:$2 sm:$0xff]  ;;  %1062 = vmatpush.bf16.msrb.mxu3 %v3230_v61 }
  0xc0   :  { %263 = vst [vmem:[#allocation2 + $0x30] sm:$0xff] %v208_v1  ;;  %v3229_v1 = vld [vmem:[%s3996_s2 + $0x168] sm:$0xff]  ;;  %923 = vmatpush.bf16.msrb.mxu2 %v3219_v0 }
  0xc2   :  { %2473 = vmatmul.msk.bf16.gmra.mxu0 %vm140_vm1, %v3181_v63  ;;  %v3211_v63 = vld [vmem:[%s3996_s2 + $0xd8] sm:$0xff] }
  0xc3   :  { %781 = vmatpush.bf16.msrb.mxu1 %v3211_v63  ;;  %1063 = vmatpush.bf16.msrb.mxu3 %v3229_v1 }
  0xc4   :  { %924 = vmatpush.bf16.msrb.mxu2 %v3218_v3 }
  0xc7   :  { %v210_v2 = vpop.f32.mrf.mxu0  ;;  %v547_v14 = vld [vmem:[#allocation2 + $0x22] ss:$2 sm:$0xff]  ;;  %1064 = vmatpush.bf16.msrb.mxu3 %v3228_v4 }
  0xc8   :  { %264 = vst [vmem:[#allocation2 + $0x38] sm:$0xff] %v210_v2  ;;  %v1113_v17 = vld [vmem:[#allocation2 + $0x24] ss:$2 sm:$0xff] }
  0xc9   :  { %v1132_v20 = vpack.c.bf16 %v1113_v17, %v1111_v19  ;;  %v3210_v2 = vld [vmem:[%s3996_s2 + $0xd0] sm:$0xff] }
  0xca   :  { %782 = vmatpush.bf16.msrb.mxu1 %v3210_v2 }
  0xcf   :  { %v213_v7 = vpop.f32.mrf.mxu0  ;;  %v332_v8 = vld [vmem:[#allocation2 + $0x31] ss:$2 sm:$0xff]  ;;  %v288_v10 = vld [vmem:[#allocation2 + $0x30] ss:$2 sm:$0xff] }
  0xd0   :  { %265 = vst [vmem:[#allocation2 + $0x40] sm:$0xff] %v213_v7  ;;  %v348_v11 = vpack.c.bf16 %v332_v8, %v330_v6  ;;  %v304_v12 = vpack.c.bf16 %v288_v10, %v286_v9  ;;  %v3209_v9 = vld [vmem:[%s3996_s2 + $0xc8] sm:$0xff] }
  0xd1   :  { %v3217_v10 = vld [vmem:[%s3996_s2 + $0x108] sm:$0xff]  ;;  %783 = vmatpush.bf16.msrb.mxu1 %v3209_v9 }
  0xd2   :  { %2474 = vmatmul.msk.bf16.gmra.mxu0 %vm140_vm1, %v124_v5  ;;  %431 = vmatmul.bf16.gmra.mxu1 %v348_v11  ;;  %v3227_v11 = vld [vmem:[%s3996_s2 + $0x158] sm:$0xff] }
  0xd3   :  { %517 = vmatmul.bf16.gmra.mxu2 %v304_v12  ;;  %1065 = vmatpush.bf16.msrb.mxu3 %v3227_v11  ;;  %v689_v1 = vld [vmem:[#allocation2 + $0x2a] ss:$2 sm:$0xff]  ;;  %v831_v2 = vld [vmem:[#allocation2 + $0x2b] ss:$2 sm:$0xff] }
  0xd4   :  { %925 = vmatpush.bf16.msrb.mxu2 %v3217_v10 }
  0xd7   :  { %v215_v13 = vpop.f32.mrf.mxu0  ;;  %v549_v15 = vld [vmem:[#allocation2 + $0x32] ss:$2 sm:$0xff] }
  0xd8   :  { %266 = vst [vmem:[#allocation2 + $0x48] sm:$0xff] %v215_v13  ;;  %v565_v16 = vpack.c.bf16 %v549_v15, %v547_v14  ;;  %v1115_v30 = vld [vmem:[#allocation2 + $0x34] ss:$2 sm:$0xff] }
  0xd9   :  { %v3208_v13 = vld [vmem:[%s3996_s2 + $0xc0] sm:$0xff]  ;;  %v3226_v15 = vld [vmem:[%s3996_s2 + $0x150] sm:$0xff] }
  0xda   :  { %648 = vmatmul.bf16.gmra.mxu3 %v565_v16  ;;  %v3216_v14 = vld [vmem:[%s3996_s2 + $0x100] sm:$0xff]  ;;  %784 = vmatpush.bf16.msrb.mxu1 %v3208_v13 }
  0xdb   :  { %926 = vmatpush.bf16.msrb.mxu2 %v3216_v14  ;;  %1066 = vmatpush.bf16.msrb.mxu3 %v3226_v15 }
  0xdf   :  { %v218_v18 = vpop.f32.mrf.mxu0  ;;  %v334_v22 = vld [vmem:[#allocation2 + $0x41] ss:$2 sm:$0xff]  ;;  %v290_v26 = vld [vmem:[#allocation2 + $0x40] ss:$2 sm:$0xff] }
  0xe0   :  { %267 = vst [vmem:[#allocation2 + $0x50] sm:$0xff] %v218_v18  ;;  %v833_v63 = vld [vmem:[#allocation2 + $0x3b] ss:$2 sm:$0xff] }
  0xe1   :  { %v849_v4 = vpack.c.bf16 %v833_v63, %v831_v2 }
  0xe2   :  { %1211 = vmatmul.bf16.vlgmr.msrb.gmra.mxu0 %v1132_v20 }
  0xe7   :  { %v220_v21 = vpop.f32.mrf.mxu0  ;;  %v1117_v23 = vld [vmem:[#allocation2 + $0x44] ss:$2 sm:$0xff] }
  0xe8   :  { %268 = vst [vmem:[#allocation2 + $0x58] sm:$0xff] %v220_v21  ;;  %v1133_v31 = vpack.c.bf16 %v1117_v23, %v1115_v30  ;;  %v551_v33 = vld [vmem:[#allocation2 + $0x42] ss:$2 sm:$0xff] }
  0xef   :  { %v223_v24 = vpop.f32.mrf.mxu0  ;;  %v336_v25 = vld [vmem:[#allocation2 + $0x51] ss:$2 sm:$0xff]  ;;  %v292_v27 = vld [vmem:[#allocation2 + $0x50] ss:$2 sm:$0xff] }
  0xf0   :  { %269 = vst [vmem:[#allocation2 + $0x60] sm:$0xff] %v223_v24  ;;  %v349_v28 = vpack.c.bf16 %v336_v25, %v334_v22  ;;  %v305_v29 = vpack.c.bf16 %v292_v27, %v290_v26  ;;  %v3225_v22 = vld [vmem:[%s3996_s2 + $0x148] sm:$0xff]  ;;  %v3224_v25 = vld [vmem:[%s3996_s2 + $0x140] sm:$0xff] }
  0xf1   :  { %1067 = vmatpush.bf16.msrb.mxu3 %v3225_v22  ;;  %v835_v13 = vld [vmem:[#allocation2 + $0x4b] ss:$2 sm:$0xff] }
  0xf2   :  { %436 = vmatmul.bf16.gmra.mxu1 %v349_v28  ;;  %522 = vmatmul.bf16.gmra.mxu2 %v305_v29 }
  0xf3   :  { %1216 = vmatmul.bf16.gmra.mxu0 %v1133_v31 }
  0xf5   :  { %1068 = vmatpush.bf16.msrb.mxu3 %v3224_v25  ;;  %v977_v25 = vld [vmem:[#allocation2 + $0x4c] ss:$2 sm:$0xff] }
  0xf7   :  { %v225_v32 = vpop.f32.mrf.mxu0  ;;  %v553_v34 = vld [vmem:[#allocation2 + $0x52] ss:$2 sm:$0xff] }
  0xf8   :  { %270 = vst [vmem:[#allocation2 + $0x68] sm:$0xff] %v225_v32  ;;  %v566_v35 = vpack.c.bf16 %v553_v34, %v551_v33  ;;  %v1119_v38 = vld [vmem:[#allocation2 + $0x54] ss:$2 sm:$0xff] }
  0xfa   :  { %653 = vmatmul.bf16.gmra.mxu3 %v566_v35 }
  0xff   :  { %v228_v36 = vpop.f32.mrf.mxu0  ;;  %v338_v41 = vld [vmem:[#allocation2 + $0x61] ss:$2 sm:$0xff]  ;;  %v294_v44 = vld [vmem:[#allocation2 + $0x60] ss:$2 sm:$0xff] }
 0x100   :  { %271 = vst [vmem:[#allocation2 + $0x70] sm:$0xff] %v228_v36  ;;  %v695_v10 = vld [vmem:[#allocation2 + $0x5a] ss:$2 sm:$0xff]  ;;  %v837_v11 = vld [vmem:[#allocation2 + $0x5b] ss:$2 sm:$0xff] }
 0x101   :  { %v850_v15 = vpack.c.bf16 %v837_v11, %v835_v13 }
 0x107   :  { %v230_v37 = vpop.f32.mrf.mxu0  ;;  %v1121_v39 = vld [vmem:[#allocation2 + $0x64] ss:$2 sm:$0xff] }
 0x108   :  { %272 = vst [vmem:[#allocation2 + $0x78] sm:$0xff] %v230_v37  ;;  %v1134_v40 = vpack.c.bf16 %v1121_v39, %v1119_v38  ;;  %v555_v53 = vld [vmem:[#allocation2 + $0x62] ss:$2 sm:$0xff] }
 0x10a   :  { %1221 = vmatmul.bf16.gmra.mxu0 %v1134_v40 }
 0x10f   :  { %v233_v42 = vpop.f32.mrf.mxu0  ;;  %v340_v43 = vld [vmem:[#allocation2 + $0x71] ss:$2 sm:$0xff]  ;;  %v296_v45 = vld [vmem:[#allocation2 + $0x70] ss:$2 sm:$0xff] }
 0x110   :  { %273 = vst [vmem:[#allocation2 + $0x80] sm:$0xff] %v233_v42  ;;  %v350_v46 = vpack.c.bf16 %v340_v43, %v338_v41  ;;  %v306_v47 = vpack.c.bf16 %v296_v45, %v294_v44  ;;  %v687_v44 = vld [vmem:[#allocation2 + $0x1a] ss:$2 sm:$0xff]  ;;  %v829_v45 = vld [vmem:[#allocation2 + $0x1b] ss:$2 sm:$0xff] }
 0x111   :  { %v706_v51 = vpack.c.bf16 %v687_v44, %v685_v49  ;;  %v981_v49 = vld [vmem:[#allocation2 + $0x6c] ss:$2 sm:$0xff] }
 0x112   :  { %441 = vmatmul.bf16.gmra.mxu1 %v350_v46  ;;  %527 = vmatmul.bf16.gmra.mxu2 %v306_v47 }
 0x117   :  { %v235_v52 = vpop.f32.mrf.mxu0  ;;  %v557_v54 = vld [vmem:[#allocation2 + $0x72] ss:$2 sm:$0xff] }
 0x118   :  { %274 = vst [vmem:[#allocation2 + $0x88] sm:$0xff] %v235_v52  ;;  %v567_v55 = vpack.c.bf16 %v557_v54, %v555_v53  ;;  %v1123_v6 = vld [vmem:[#allocation2 + $0x74] ss:$2 sm:$0xff]  ;;  %v848_v52 = vpack.c.bf16 %v829_v45, %v827_v50 }
 0x119   :  { %v971_v54 = vld [vmem:[#allocation2 + $0x1c] ss:$2 sm:$0xff]  ;;  %v3242_v45 = vld [vmem:[%s3996_s2 + $0x1d0] sm:$0xff] }
 0x11a   :  { %658 = vmatmul.bf16.gmra.mxu3 %v567_v55  ;;  %v990_v60 = vpack.c.bf16 %v971_v54, %v969_v59 }
 0x11f   :  { %v238_v62 = vpop.f32.mrf.mxu0  ;;  %v342_v12 = vld [vmem:[#allocation2 + $0x81] ss:$2 sm:$0xff]  ;;  %v298_v18 = vld [vmem:[#allocation2 + $0x80] ss:$2 sm:$0xff] }
 0x120   :  { %275 = vst [vmem:[#allocation2 + $0x90] sm:$0xff] %v238_v62  ;;  %v691_v62 = vld [vmem:[#allocation2 + $0x3a] ss:$2 sm:$0xff] }
 0x121   :  { %v707_v3 = vpack.c.bf16 %v691_v62, %v689_v1  ;;  %v983_v44 = vld [vmem:[#allocation2 + $0x7c] ss:$2 sm:$0xff] }
 0x122   :  { %v993_v50 = vpack.c.bf16 %v983_v44, %v981_v49 }
 0x127   :  { %v240_v5 = vpop.f32.mrf.mxu0  ;;  %v1125_v7 = vld [vmem:[#allocation2 + $0x84] ss:$2 sm:$0xff] }
 0x128   :  { %276 = vst [vmem:[#allocation2 + $0x98] sm:$0xff] %v240_v5  ;;  %v1135_v8 = vpack.c.bf16 %v1125_v7, %v1123_v6  ;;  %v559_v28 = vld [vmem:[#allocation2 + $0x82] ss:$2 sm:$0xff] }
 0x129   :  { %v975_v5 = vld [vmem:[#allocation2 + $0x3c] ss:$2 sm:$0xff]  ;;  %v973_v6 = vld [vmem:[#allocation2 + $0x2c] ss:$2 sm:$0xff] }
 0x12a   :  { %1226 = vmatmul.bf16.gmra.mxu0 %v1135_v8  ;;  %v991_v7 = vpack.c.bf16 %v975_v5, %v973_v6 }
 0x12f   :  { %v243_v16 = vpop.f32.mrf.mxu0  ;;  %v344_v17 = vld [vmem:[#allocation2 + $0x91] ss:$2 sm:$0xff]  ;;  %v300_v19 = vld [vmem:[#allocation2 + $0x90] ss:$2 sm:$0xff]  ;;  %v427_v23 = vpop.f32.mrf.mxu1 }
 0x130   :  { %277 = vst [vmem:[#allocation2 + $0xa0] sm:$0xff] %v243_v16  ;;  %v351_v20 = vpack.c.bf16 %v344_v17, %v342_v12  ;;  %v307_v21 = vpack.c.bf16 %v300_v19, %v298_v18  ;;  %v693_v12 = vld [vmem:[#allocation2 + $0x4a] ss:$2 sm:$0xff]  ;;  %v843_v59 = vld [vmem:[#allocation2 + $0x8b] ss:$2 sm:$0xff] }
 0x131   :  { %v708_v14 = vpack.c.bf16 %v695_v10, %v693_v12  ;;  %v3247_v16 = vld [vmem:[%s3996_s2 + $0x1f8] sm:$0xff] }
 0x132   :  { %446 = vmatmul.bf16.gmra.mxu1 %v351_v20  ;;  %532 = vmatmul.bf16.gmra.mxu2 %v307_v21  ;;  %v3255_v17 = vld [vmem:[%s3996_s2 + $0x238] sm:$0xff] }
 0x133   :  { %1345 = vmatpush.bf16.msra.mxu1 %v3247_v16  ;;  %1487 = vmatpush.bf16.msra.mxu2 %v3255_v17  ;;  %v979_v21 = vld [vmem:[#allocation2 + $0x5c] ss:$2 sm:$0xff]  ;;  %v985_v6 = vld [vmem:[#allocation2 + $0x8c] ss:$2 sm:$0xff] }
 0x136   :  { %v513_v24 = vpop.f32.mrf.mxu2 }
 0x137   :  { %v514_v26 = vadd.f32 %v513_v24, %v427_v23  ;;  %v245_v27 = vpop.f32.mrf.mxu0  ;;  %v561_v29 = vld [vmem:[#allocation2 + $0x92] ss:$2 sm:$0xff]  ;;  %v346_v31 = vld [vmem:[#allocation2 + $0xa1] ss:$2 sm:$0xf]  ;;  %v3616_v46 = vpop.f32.mrf.mxu1 }
 0x138   :  { %278 = vst [vmem:[#allocation2 + $0xa8] sm:$0xff] %v245_v27  ;;  %v568_v30 = vpack.c.bf16 %v561_v29, %v559_v28  ;;  %v302_v32 = vld [vmem:[#allocation2 + $0xa0] ss:$2 sm:$0xf]  ;;  %v352_v35 = vpack.c.bf16 %v346_v31, %v346_v31  ;;  %v3246_v23 = vld [vmem:[%s3996_s2 + $0x1f0] sm:$0xff]  ;;  %v3245_v29 = vld [vmem:[%s3996_s2 + $0x1e8] sm:$0xff] }
 0x139   :  { %v308_v36 = vpack.c.bf16 %v302_v32, %v302_v32  ;;  %v1127_v40 = vld [vmem:[#allocation2 + $0x94] ss:$2 sm:$0xff]  ;;  %1346 = vmatpush.bf16.msra.mxu1 %v3246_v23  ;;  %v1255_v23 = vld [vmem:[#allocation2 + $0x25] ss:$2 sm:$0xff] }
 0x13a   :  { %663 = vmatmul.bf16.gmra.mxu3 %v568_v30  ;;  %v3254_v24 = vld [vmem:[%s3996_s2 + $0x230] sm:$0xff]  ;;  %v3253_v30 = vld [vmem:[%s3996_s2 + $0x228] sm:$0xff] }
 0x13b   :  { %1488 = vmatpush.bf16.msra.mxu2 %v3254_v24  ;;  %v699_v32 = vld [vmem:[#allocation2 + $0x7a] ss:$2 sm:$0xff] }
 0x13c   :  { %v1397_v24 = vld [vmem:[#allocation2 + $0x26] ss:$2 sm:$0xff] }
 0x13d   :  { %v644_v33 = vpop.f32.mrf.mxu3  ;;  %1347 = vmatpush.bf16.msra.mxu1 %v3245_v29 }
 0x13e   :  { %v3614_v34 = vadd.f32 %v644_v33, %v514_v26  ;;  %v3618_v47 = vpop.f32.mrf.mxu2  ;;  %v992_v26 = vpack.c.bf16 %v979_v21, %v977_v25  ;;  %v841_v33 = vld [vmem:[#allocation2 + $0x7b] ss:$2 sm:$0xff] }
 0x13f   :  { %v248_v37 = vpop.f32.mrf.mxu0  ;;  %v563_v38 = vld [vmem:[#allocation2 + $0xa2] ss:$2 sm:$0xf]  ;;  %1489 = vmatpush.bf16.msra.mxu2 %v3253_v30 }
 0x140   :  { %279 = vst [vmem:[#allocation2 + $0xb0] sm:$0xff] %v248_v37  ;;  %v569_v42 = vpack.c.bf16 %v563_v38, %v563_v38  ;;  %v3252_v37 = vld [vmem:[%s3996_s2 + $0x220] sm:$0xff]  ;;  %v697_v38 = vld [vmem:[#allocation2 + $0x6a] ss:$2 sm:$0xff] }
 0x142   :  { %451 = vmatmul.bf16.gmra.mxu1 %v352_v35  ;;  %537 = vmatmul.bf16.gmra.mxu2 %v308_v36  ;;  %v3244_v36 = vld [vmem:[%s3996_s2 + $0x1e0] sm:$0xff] }
 0x143   :  { %1348 = vmatpush.bf16.msra.mxu1 %v3244_v36  ;;  %1490 = vmatpush.bf16.msra.mxu2 %v3252_v37 }
 0x145   :  { %v3620_v53 = vpop.f32.mrf.mxu3 }
 0x147   :  { %v250_v39 = vpop.f32.mrf.mxu0  ;;  %v1129_v41 = vld [vmem:[#allocation2 + $0xa4] ss:$2 sm:$0xff]  ;;  %v847_v13 = vld [vmem:[#allocation2 + $0xab] ss:$2 sm:$0xf] }
 0x148   :  { %280 = vst [vmem:[#allocation2 + $0xb8] sm:$0xff] %v250_v39  ;;  %v1136_v43 = vpack.c.bf16 %v1129_v41, %v1127_v40  ;;  %v839_v39 = vld [vmem:[#allocation2 + $0x6b] ss:$2 sm:$0xff]  ;;  %v709_v40 = vpack.c.bf16 %v699_v32, %v697_v38  ;;  %v705_v12 = vld [vmem:[#allocation2 + $0xaa] ss:$2 sm:$0xf]  ;;  %v853_v16 = vpack.c.bf16 %v847_v13, %v847_v13 }
 0x149   :  { %v851_v41 = vpack.c.bf16 %v841_v33, %v839_v39  ;;  %v989_v17 = vld [vmem:[#allocation2 + $0xac] ss:$2 sm:$0xf] }
 0x14a   :  { %668 = vmatmul.bf16.gmra.mxu3 %v569_v42  ;;  %1231 = vmatmul.bf16.gmra.mxu0 %v1136_v43  ;;  %v3243_v42 = vld [vmem:[%s3996_s2 + $0x1d8] sm:$0xff]  ;;  %v995_v21 = vpack.c.bf16 %v989_v17, %v989_v17 }
 0x14b   :  { %v3251_v43 = vld [vmem:[%s3996_s2 + $0x218] sm:$0xff]  ;;  %1349 = vmatpush.bf16.msra.mxu1 %v3243_v42 }
 0x14c   :  { %1491 = vmatpush.bf16.msra.mxu2 %v3251_v43 }
 0x14f   :  { %v253_v48 = vpop.f32.mrf.mxu0  ;;  %v432_v55 = vpop.f32.mrf.mxu1  ;;  %v1131_v27 = vld [vmem:[#allocation2 + $0xb4] ss:$2 sm:$0xf]  ;;  %1350 = vmatpush.bf16.msra.mxu1 %v3242_v45  ;;  %v1257_v45 = vld [vmem:[#allocation2 + $0x35] ss:$2 sm:$0xff] }
 0x150   :  { %v1137_v28 = vpack.c.bf16 %v1131_v27, %v1131_v27  ;;  %v3250_v48 = vld [vmem:[%s3996_s2 + $0x210] sm:$0xff] }
 0x151   :  { %1492 = vmatpush.bf16.msra.mxu2 %v3250_v48  ;;  %v1395_v27 = vld [vmem:[#allocation2 + $0x16] ss:$2 sm:$0xff] }
 0x152   :  { %785 = vmatmul.bf16.vlgmr.msrb.gmra.mxu1 %v706_v51  ;;  %927 = vmatmul.bf16.vlgmr.msrb.gmra.mxu2 %v848_v52  ;;  %v3241_v51 = vld [vmem:[%s3996_s2 + $0x1c8] sm:$0xff]  ;;  %v1416_v30 = vpack.c.bf16 %v1397_v24, %v1395_v27  ;;  %v1399_v48 = vld [vmem:[#allocation2 + $0x36] ss:$2 sm:$0xff] }
 0x153   :  { %v3249_v52 = vld [vmem:[%s3996_s2 + $0x208] sm:$0xff]  ;;  %1351 = vmatpush.bf16.msra.mxu1 %v3241_v51 }
 0x154   :  { %v1267_v24 = vld [vmem:[#allocation2 + $0x85] ss:$2 sm:$0xff] }
 0x155   :  { %1493 = vmatpush.bf16.msra.mxu2 %v3249_v52 }
 0x156   :  { %v518_v56 = vpop.f32.mrf.mxu2 }
 0x157   :  { %v519_v57 = vadd.f32 %v518_v56, %v432_v55  ;;  %v255_v58 = vpop.f32.mrf.mxu0  ;;  %v3624_v8 = vpop.f32.mrf.mxu1  ;;  %v703_v56 = vld [vmem:[#allocation2 + $0x9a] ss:$2 sm:$0xff] }
 0x158   :  { %v701_v58 = vld [vmem:[#allocation2 + $0x8a] ss:$2 sm:$0xff] }
 0x159   :  { %v710_v62 = vpack.c.bf16 %v703_v56, %v701_v58 }
 0x15a   :  { %1069 = vmatmul.bf16.vlgmr.msrb.gmra.mxu3 %v990_v60  ;;  %1236 = vmatmul.bf16.gmra.mxu0 %v1137_v28  ;;  %v3240_v60 = vld [vmem:[%s3996_s2 + $0x1c0] sm:$0xff] }
 0x15b   :  { %1352 = vmatpush.bf16.msra.mxu1 %v3240_v60 }
 0x15d   :  { %v649_v61 = vpop.f32.mrf.mxu3 }
 0x15e   :  { %v3622_v0 = vadd.f32 %v649_v61, %v519_v57  ;;  %v3626_v9 = vpop.f32.mrf.mxu2  ;;  %v845_v57 = vld [vmem:[#allocation2 + $0x9b] ss:$2 sm:$0xff] }
 0x15f   :  { %v3248_v61 = vld [vmem:[%s3996_s2 + $0x200] sm:$0xff]  ;;  %v852_v63 = vpack.c.bf16 %v845_v57, %v843_v59  ;;  %v3686_v10 = vpop.f32.mrf.mxu0 }
 0x160   :  { %1494 = vmatpush.bf16.msra.mxu2 %v3248_v61 }
 0x162   :  { %790 = vmatmul.bf16.gmra.mxu1 %v707_v3  ;;  %932 = vmatmul.bf16.gmra.mxu2 %v849_v4  ;;  %v987_v4 = vld [vmem:[#allocation2 + $0x9c] ss:$2 sm:$0xff] }
 0x165   :  { %v3634_v18 = vpop.f32.mrf.mxu3 }
 0x16a   :  { %1074 = vmatmul.bf16.gmra.mxu3 %v991_v7  ;;  %v994_v7 = vpack.c.bf16 %v987_v4, %v985_v6  ;;  %v1261_v4 = vld [vmem:[#allocation2 + $0x55] ss:$2 sm:$0xff] }
 0x16f   :  { %v437_v19 = vpop.f32.mrf.mxu1 }
 0x172   :  { %795 = vmatmul.bf16.gmra.mxu1 %v708_v14  ;;  %937 = vmatmul.bf16.gmra.mxu2 %v850_v15  ;;  %v711_v15 = vpack.c.bf16 %v705_v12, %v705_v12 }
 0x175   :  { %v523_v20 = vpop.f32.mrf.mxu2 }
 0x176   :  { %v524_v22 = vadd.f32 %v523_v20, %v437_v19  ;;  %v3690_v19 = vpop.f32.mrf.mxu0 }
 0x177   :  { %v3674_v54 = vpop.f32.mrf.mxu1 }
 0x17a   :  { %1079 = vmatmul.bf16.gmra.mxu3 %v992_v26  ;;  %v1253_v26 = vld [vmem:[#allocation2 + $0x15] ss:$2 sm:$0xff] }
 0x17b   :  { %v1274_v29 = vpack.c.bf16 %v1255_v23, %v1253_v26 }
 0x17d   :  { %v654_v31 = vpop.f32.mrf.mxu3  ;;  %v3676_v55 = vpop.f32.mrf.mxu2 }
 0x17e   :  { %v3648_v35 = vadd.f32 %v654_v31, %v524_v22  ;;  %v3696_v28 = vpop.f32.mrf.mxu0 }
 0x182   :  { %800 = vmatmul.bf16.gmra.mxu1 %v709_v40  ;;  %942 = vmatmul.bf16.gmra.mxu2 %v851_v41  ;;  %v1259_v40 = vld [vmem:[#allocation2 + $0x45] ss:$2 sm:$0xff]  ;;  %v1401_v41 = vld [vmem:[#allocation2 + $0x46] ss:$2 sm:$0xff] }
 0x183   :  { %v1275_v49 = vpack.c.bf16 %v1259_v40, %v1257_v45 }
 0x185   :  { %v3684_v1 = vpop.f32.mrf.mxu3 }
 0x186   :  { %v3700_v37 = vpop.f32.mrf.mxu0 }
 0x18a   :  { %1084 = vmatmul.bf16.gmra.mxu3 %v993_v50  ;;  %v1417_v50 = vpack.c.bf16 %v1401_v41, %v1399_v48 }
 0x18e   :  { %v3706_v51 = vpop.f32.mrf.mxu0 }
 0x18f   :  { %v442_v2 = vpop.f32.mrf.mxu1 }
 0x192   :  { %805 = vmatmul.bf16.gmra.mxu1 %v710_v62  ;;  %947 = vmatmul.bf16.gmra.mxu2 %v852_v63  ;;  %v1263_v62 = vld [vmem:[#allocation2 + $0x65] ss:$2 sm:$0xff]  ;;  %v1405_v63 = vld [vmem:[#allocation2 + $0x66] ss:$2 sm:$0xff] }
 0x195   :  { %v528_v3 = vpop.f32.mrf.mxu2 }
 0x196   :  { %v529_v5 = vadd.f32 %v528_v3, %v442_v2  ;;  %v3710_v59 = vpop.f32.mrf.mxu0 }
 0x197   :  { %v3692_v20 = vpop.f32.mrf.mxu1 }
 0x19a   :  { %1089 = vmatmul.bf16.gmra.mxu3 %v994_v7  ;;  %v1276_v7 = vpack.c.bf16 %v1263_v62, %v1261_v4 }
 0x19d   :  { %v659_v11 = vpop.f32.mrf.mxu3  ;;  %v3694_v22 = vpop.f32.mrf.mxu2 }
 0x19e   :  { %v3688_v14 = vadd.f32 %v659_v11, %v529_v5  ;;  %v1403_v5 = vld [vmem:[#allocation2 + $0x56] ss:$2 sm:$0xff] }
 0x19f   :  { %v1418_v11 = vpack.c.bf16 %v1405_v63, %v1403_v5 }
 0x1a2   :  { %810 = vmatmul.bf16.gmra.mxu1 %v711_v15  ;;  %952 = vmatmul.bf16.gmra.mxu2 %v853_v16 }
 0x1a5   :  { %v3698_v31 = vpop.f32.mrf.mxu3 }
 0x1a7   :  { %v3715_v12 = vpop.f32.mrf.mxu0 }
 0x1aa   :  { %1094 = vmatmul.bf16.gmra.mxu3 %v995_v21 }
 0x1af   :  { %v447_v25 = vpop.f32.mrf.mxu1  ;;  %v3721_v26 = vpop.f32.mrf.mxu0 }
 0x1b2   :  { %1353 = vmatmul.bf16.vlgmr.msra.gmra.mxu1 %v1274_v29  ;;  %1495 = vmatmul.bf16.vlgmr.msra.gmra.mxu2 %v1416_v30  ;;  %v1265_v29 = vld [vmem:[#allocation2 + $0x75] ss:$2 sm:$0xff]  ;;  %v1407_v30 = vld [vmem:[#allocation2 + $0x76] ss:$2 sm:$0xff] }
 0x1b5   :  { %v533_v32 = vpop.f32.mrf.mxu2 }
 0x1b6   :  { %v534_v33 = vadd.f32 %v533_v32, %v447_v25  ;;  %v1409_v25 = vld [vmem:[#allocation2 + $0x86] ss:$2 sm:$0xff] }
 0x1b7   :  { %v449_v36 = vpop.f32.mrf.mxu1 }
 0x1bd   :  { %v535_v38 = vpop.f32.mrf.mxu2  ;;  %v664_v39 = vpop.f32.mrf.mxu3 }
 0x1be   :  { %v3702_v42 = vadd.f32 %v535_v38, %v449_v36  ;;  %v3704_v43 = vadd.f32 %v664_v39, %v534_v33  ;;  %v1277_v33 = vpack.c.bf16 %v1267_v24, %v1265_v29  ;;  %v1419_v36 = vpack.c.bf16 %v1409_v25, %v1407_v30 }
 0x1bf   :  { %v452_v44 = vpop.f32.mrf.mxu1 }
 0x1c2   :  { %1358 = vmatmul.bf16.gmra.mxu1 %v1275_v49  ;;  %1500 = vmatmul.bf16.gmra.mxu2 %v1417_v50  ;;  %v1271_v49 = vld [vmem:[#allocation2 + $0xa5] ss:$2 sm:$0xff]  ;;  %v1413_v50 = vld [vmem:[#allocation2 + $0xa6] ss:$2 sm:$0xff] }
 0x1c5   :  { %v538_v52 = vpop.f32.mrf.mxu2  ;;  %v3708_v56 = vpop.f32.mrf.mxu3 }
 0x1c6   :  { %v539_v57 = vadd.f32 %v538_v52, %v452_v44 }
 0x1c7   :  { %v454_v58 = vpop.f32.mrf.mxu1  ;;  %v3728_v40 = vpop.f32.mrf.mxu0 }
 0x1c8   :  { %v1411_v58 = vld [vmem:[#allocation2 + $0x96] ss:$2 sm:$0xff] }
 0x1c9   :  { %v1420_v63 = vpack.c.bf16 %v1413_v50, %v1411_v58 }
 0x1cd   :  { %v540_v60 = vpop.f32.mrf.mxu2  ;;  %v669_v61 = vpop.f32.mrf.mxu3 }
 0x1ce   :  { %v3712_v2 = vadd.f32 %v669_v61, %v539_v57  ;;  %v1269_v57 = vld [vmem:[#allocation2 + $0x95] ss:$2 sm:$0xff] }
 0x1cf   :  { %v786_v3 = vpop.f32.mrf.mxu1  ;;  %v1234_v60 = vpop.f32.mrf.mxu0  ;;  %v1278_v62 = vpack.c.bf16 %v1271_v49, %v1269_v57  ;;  %v682_v57 = vadd.f32 %v3708_v56, %v3702_v42  ;;  %v516_v42 = vadd.f32 %v3618_v47, %v3616_v46 }
 0x1d0   :  { %v815_v6 = vadd.f32 %v786_v3, %v3614_v34 }
 0x1d2   :  { %1363 = vmatmul.bf16.gmra.mxu1 %v1276_v7  ;;  %1505 = vmatmul.bf16.gmra.mxu2 %v1418_v11 }
 0x1d5   :  { %v671_v13 = vpop.f32.mrf.mxu3  ;;  %v928_v15 = vpop.f32.mrf.mxu2 }
 0x1d6   :  { %v957_v16 = vadd.f32 %v928_v15, %v815_v6  ;;  %v1273_v15 = vld [vmem:[#allocation2 + $0xb5] ss:$2 sm:$0xf] }
 0x1d7   :  { %v3717_v17 = vpop.f32.mrf.mxu1  ;;  %v1237_v7 = vpop.f32.mrf.mxu0  ;;  %v1279_v25 = vpack.c.bf16 %v1273_v15, %v1273_v15 }
 0x1dd   :  { %v3719_v21 = vpop.f32.mrf.mxu2  ;;  %v1070_v23 = vpop.f32.mrf.mxu3 }
 0x1de   :  { %v3723_v27 = vadd.f32 %v1070_v23, %v957_v16  ;;  %v1415_v16 = vld [vmem:[#allocation2 + $0xb6] ss:$2 sm:$0xf] }
 0x1df   :  { %v791_v34 = vpop.f32.mrf.mxu1  ;;  %v1239_v29 = vpop.f32.mrf.mxu0 }
 0x1e0   :  { %v817_v32 = vadd.f32 %v791_v34, %v3622_v0  ;;  %v1421_v34 = vpack.c.bf16 %v1415_v16, %v1415_v16 }
 0x1e2   :  { %1368 = vmatmul.bf16.gmra.mxu1 %v1277_v33  ;;  %1510 = vmatmul.bf16.gmra.mxu2 %v1419_v36 }
 0x1e5   :  { %v933_v38 = vpop.f32.mrf.mxu2  ;;  %v3726_v39 = vpop.f32.mrf.mxu3 }
 0x1e6   :  { %v959_v41 = vadd.f32 %v933_v38, %v817_v32 }
 0x1e7   :  { %v3730_v44 = vpop.f32.mrf.mxu1 }
 0x1ed   :  { %v3732_v45 = vpop.f32.mrf.mxu2  ;;  %v1075_v48 = vpop.f32.mrf.mxu3 }
 0x1ee   :  { %v3734_v52 = vadd.f32 %v1075_v48, %v959_v41 }
 0x1ef   :  { %v796_v0 = vpop.f32.mrf.mxu1 }
 0x1f0   :  { %v819_v61 = vadd.f32 %v796_v0, %v3648_v35 }
 0x1f2   :  { %1373 = vmatmul.bf16.gmra.mxu1 %v1278_v62  ;;  %1515 = vmatmul.bf16.gmra.mxu2 %v1420_v63 }
 0x1f5   :  { %v938_v3 = vpop.f32.mrf.mxu2  ;;  %v3737_v4 = vpop.f32.mrf.mxu3 }
 0x1f6   :  { %v961_v5 = vadd.f32 %v938_v3, %v819_v61 }
 0x1f7   :  { %v3739_v6 = vpop.f32.mrf.mxu1 }
 0x1fd   :  { %v3741_v11 = vpop.f32.mrf.mxu2  ;;  %v1080_v13 = vpop.f32.mrf.mxu3 }
 0x1fe   :  { %v3743_v23 = vadd.f32 %v1080_v13, %v961_v5 }
 0x1ff   :  { %v801_v24 = vpop.f32.mrf.mxu1 }
 0x200   :  { %v821_v35 = vadd.f32 %v801_v24, %v3688_v14 }
 0x202   :  { %1378 = vmatmul.bf16.gmra.mxu1 %v1279_v25  ;;  %1520 = vmatmul.bf16.gmra.mxu2 %v1421_v34 }
 0x205   :  { %v943_v30 = vpop.f32.mrf.mxu2  ;;  %v3746_v32 = vpop.f32.mrf.mxu3 }
 0x206   :  { %v963_v33 = vadd.f32 %v943_v30, %v821_v35 }
 0x207   :  { %v3748_v36 = vpop.f32.mrf.mxu1 }
 0x20d   :  { %v3750_v38 = vpop.f32.mrf.mxu2  ;;  %v1085_v41 = vpop.f32.mrf.mxu3 }
 0x20e   :  { %v3752_v48 = vadd.f32 %v1085_v41, %v963_v33  ;;  %v1241_v41 = vadd.f32 %v3686_v10, %v3723_v27 }
 0x20f   :  { %v806_v49 = vpop.f32.mrf.mxu1 }
 0x210   :  { %v823_v50 = vadd.f32 %v806_v49, %v3704_v43 }
 0x215   :  { %v948_v14 = vpop.f32.mrf.mxu2  ;;  %v3755_v0 = vpop.f32.mrf.mxu3 }
 0x216   :  { %v965_v58 = vadd.f32 %v948_v14, %v823_v50  ;;  %v674_v50 = vadd.f32 %v3620_v53, %v516_v42  ;;  %v521_v53 = vadd.f32 %v3626_v9, %v3624_v8 }
 0x217   :  { %v808_v61 = vpop.f32.mrf.mxu1 }
 0x218   :  { %v824_v62 = vadd.f32 %v808_v61, %v682_v57  ;;  %v816_v57 = vadd.f32 %v3717_v17, %v674_v50  ;;  %v1243_v17 = vadd.f32 %v3696_v28, %v3734_v52 }
 0x21d   :  { %v950_v63 = vpop.f32.mrf.mxu2  ;;  %v1090_v3 = vpop.f32.mrf.mxu3 }
 0x21e   :  { %v966_v5 = vadd.f32 %v950_v63, %v824_v62  ;;  %v1107_v13 = vadd.f32 %v1090_v3, %v965_v58  ;;  %v958_v58 = vadd.f32 %v3719_v21, %v816_v57 }
 0x21f   :  { %v811_v15 = vpop.f32.mrf.mxu1 }
 0x220   :  { %v825_v16 = vadd.f32 %v811_v15, %v3712_v2  ;;  %v1100_v62 = vadd.f32 %v3726_v39, %v958_v58 }
 0x222   :  { %v1242_v47 = vadd.f32 %v3690_v19, %v1100_v62 }
 0x225   :  { %v953_v24 = vpop.f32.mrf.mxu2  ;;  %v1092_v35 = vpop.f32.mrf.mxu3 }
 0x226   :  { %v967_v25 = vadd.f32 %v953_v24, %v825_v16  ;;  %v1108_v43 = vadd.f32 %v1092_v35, %v966_v5 }
 0x227   :  { %v813_v34 = vpop.f32.mrf.mxu1 }
 0x228   :  { %v1250_v29 = vadd.f32 %v1234_v60, %v1108_v43 }
 0x22d   :  { %v955_v30 = vpop.f32.mrf.mxu2  ;;  %v1095_v33 = vpop.f32.mrf.mxu3 }
 0x22e   :  { %v1109_v56 = vadd.f32 %v1095_v33, %v967_v25 }
 0x22f   :  { %v1354_v49 = vpop.f32.mrf.mxu1 }
 0x230   :  { %v1383_v14 = vadd.f32 %v1354_v49, %v1241_v41  ;;  %v1251_v2 = vadd.f32 %v1237_v7, %v1109_v56  ;;  %v676_v7 = vadd.f32 %v3634_v18, %v521_v53  ;;  %v1245_v18 = vadd.f32 %v3706_v51, %v3743_v23 }
 0x231   :  { %v531_v51 = vadd.f32 %v3694_v22, %v3692_v20 }
 0x232   :  { %v818_v15 = vadd.f32 %v3730_v44, %v676_v7 }
 0x233   :  { %v680_v62 = vadd.f32 %v3698_v31, %v531_v51  ;;  %v3278_v51 = vld [vmem:[%s3997_s3 + $0x90] sm:$0xff] }
 0x234   :  { %v960_v19 = vadd.f32 %v3732_v45, %v818_v15 }
 0x235   :  { %v1097_v61 = vpop.f32.mrf.mxu3  ;;  %v1496_v60 = vpop.f32.mrf.mxu2 }
 0x236   :  { %v3768_v63 = vadd.f32 %v1496_v60, %v1383_v14  ;;  %v1102_v24 = vadd.f32 %v3737_v4, %v960_v19 }
 0x237   :  { %v1356_v46 = vpop.f32.mrf.mxu1 }
 0x238   :  { %v1384_v3 = vadd.f32 %v1356_v46, %v1242_v47  ;;  %v1244_v35 = vadd.f32 %v3700_v37, %v1102_v24  ;;  %v1249_v37 = vadd.f32 %v3728_v40, %v1107_v13  ;;  %v3259_v24 = vld [vmem:[%s3998_s4 + $0x18] sm:$0xff] }
 0x23d   :  { %v1498_v10 = vpop.f32.mrf.mxu2 }
 0x23e   :  { %v3773_v27 = vadd.f32 %v1498_v10, %v1384_v3  ;;  %v526_v3 = vadd.f32 %v3676_v55, %v3674_v54  ;;  %v822_v10 = vadd.f32 %v3748_v36, %v680_v62 }
 0x23f   :  { %v1359_v21 = vpop.f32.mrf.mxu1 }
 0x240   :  { %v1545_v39 = vpack.c.bf16 %v3773_v27, %v3768_v63  ;;  %v1385_v5 = vadd.f32 %v1359_v21, %v1243_v17  ;;  %v678_v53 = vadd.f32 %v3684_v1, %v526_v3  ;;  %v964_v40 = vadd.f32 %v3750_v38, %v822_v10  ;;  %v1544_v63 = vld [vmem:[%s3998_s4 + $0x20] sm:$0xf]  ;;  %v3286_v3 = vld [vmem:[%s3997_s3 + $0xd0] sm:$0xff] }
 0x241   :  { %v1247_v1 = vadd.f32 %v3715_v12, %v3752_v48  ;;  %v3256_v12 = vld [vmem:[%s3998_s4] sm:$0xff]  ;;  %v3258_v48 = vld [vmem:[%s3998_s4 + $0x10] sm:$0xff]  ;;  %v1568_v27 = vunpack.c.l.b16 %v1544_v63  ;;  %v3295_v63 = vld [vmem:[%s3997_s3 + $0x118] sm:$0xff] }
 0x242   :  { %v1106_v20 = vadd.f32 %v3755_v0, %v964_v40  ;;  %v3277_v40 = vld [vmem:[%s3997_s3 + $0x88] sm:$0xff] }
 0x244   :  { %v1248_v54 = vadd.f32 %v3721_v26, %v1106_v20  ;;  %v3285_v20 = vld [vmem:[%s3997_s3 + $0xc8] sm:$0xff] }
 0x245   :  { %v1501_v16 = vpop.f32.mrf.mxu2 }
 0x246   :  { %v1527_v8 = vadd.f32 %v1501_v16, %v1385_v5 }
 0x247   :  { %v1361_v9 = vpop.f32.mrf.mxu1 }
 0x248   :  { %v1386_v25 = vadd.f32 %v1361_v9, %v1244_v35  ;;  %v3263_v9 = vld [vmem:[%s3997_s3 + $0x18] sm:$0xff]  ;;  %v3266_v35 = vld [vmem:[%s3997_s3 + $0x30] sm:$0xff] }
 0x249   :  { %1754 = vmatpush.bf16.msra.mxu0 %v3263_v9 }
 0x24d   :  { %v1503_v28 = vpop.f32.mrf.mxu2 }
 0x24e   :  { %v1528_v52 = vadd.f32 %v1503_v28, %v1386_v25  ;;  %v3262_v25 = vld [vmem:[%s3997_s3 + $0x10] sm:$0xff]  ;;  %v3271_v28 = vld [vmem:[%s3997_s3 + $0x58] sm:$0xff] }
 0x24f   :  { %v1364_v43 = vpop.f32.mrf.mxu1  ;;  %1755 = vmatpush.bf16.msra.mxu0 %v3262_v25  ;;  %1821 = vmatpush.bf16.msrb.mxu1 %v3271_v28  ;;  %v3293_v25 = vld [vmem:[%s3997_s3 + $0x108] sm:$0xff]  ;;  %v3292_v28 = vld [vmem:[%s3997_s3 + $0x100] sm:$0xff] }
 0x250   :  { %v1546_v34 = vpack.c.bf16 %v1528_v52, %v1527_v8  ;;  %v1387_v30 = vadd.f32 %v1364_v43, %v1245_v18  ;;  %v3267_v8 = vld [vmem:[%s3997_s3 + $0x38] sm:$0xff]  ;;  %v3265_v52 = vld [vmem:[%s3997_s3 + $0x28] sm:$0xff] }
 0x251   :  { %v3275_v18 = vld [vmem:[%s3997_s3 + $0x78] sm:$0xff]  ;;  %v3261_v43 = vld [vmem:[%s3997_s3 + $0x8] sm:$0xff] }
 0x252   :  { %1891 = vmatpush.bf16.msrb.mxu2 %v3275_v18 }
 0x253   :  { %1756 = vmatpush.bf16.msra.mxu0 %v3261_v43 }
 0x255   :  { %v1506_v33 = vpop.f32.mrf.mxu2 }
 0x257   :  { %v1366_v44 = vpop.f32.mrf.mxu1 }
 0x25d   :  { %v1508_v42 = vpop.f32.mrf.mxu2 }
 0x25f   :  { %v1369_v45 = vpop.f32.mrf.mxu1 }
 0x260   :  { %v1389_v38 = vadd.f32 %v1369_v45, %v1247_v1  ;;  %v3269_v45 = vld [vmem:[%s3997_s3 + $0x48] sm:$0xff]  ;;  %v3284_v1 = vld [vmem:[%s3997_s3 + $0xc0] sm:$0xff] }
 0x265   :  { %v1511_v56 = vpop.f32.mrf.mxu2 }
 0x267   :  { %v1371_v41 = vpop.f32.mrf.mxu1 }
 0x268   :  { %v1390_v36 = vadd.f32 %v1371_v41, %v1248_v54 }
 0x26d   :  { %v1513_v4 = vpop.f32.mrf.mxu2 }
 0x26e   :  { %v1532_v0 = vadd.f32 %v1513_v4, %v1390_v36  ;;  %v3268_v4 = vld [vmem:[%s3997_s3 + $0x40] sm:$0xff] }
 0x26f   :  { %v1374_v49 = vpop.f32.mrf.mxu1 }
 0x270   :  { %v1391_v57 = vadd.f32 %v1374_v49, %v1249_v37  ;;  %v3272_v49 = vld [vmem:[%s3997_s3 + $0x60] sm:$0xff]  ;;  %v3279_v37 = vld [vmem:[%s3997_s3 + $0x98] sm:$0xff] }
 0x275   :  { %v1516_v50 = vpop.f32.mrf.mxu2 }
 0x276   :  { %v1533_v61 = vadd.f32 %v1516_v50, %v1391_v57  ;;  %v3283_v57 = vld [vmem:[%s3997_s3 + $0xb8] sm:$0xff] }
 0x277   :  { %v1376_v14 = vpop.f32.mrf.mxu1 }
 0x278   :  { %v1392_v58 = vadd.f32 %v1376_v14, %v1250_v29  ;;  %v820_v29 = vadd.f32 %v3739_v6, %v678_v53 }
 0x27a   :  { %v962_v31 = vadd.f32 %v3741_v11, %v820_v29  ;;  %v1531_v11 = vadd.f32 %v1511_v56, %v1389_v38  ;;  %v3273_v56 = vld [vmem:[%s3997_s3 + $0x68] sm:$0xff] }
 0x27b   :  { %v3281_v29 = vld [vmem:[%s3997_s3 + $0xa8] sm:$0xff] }
 0x27c   :  { %v1104_v5 = vadd.f32 %v3746_v32, %v962_v31  ;;  %v1548_v16 = vpack.c.bf16 %v1532_v0, %v1531_v11  ;;  %v1529_v32 = vadd.f32 %v1506_v33, %v1387_v30  ;;  %v3270_v30 = vld [vmem:[%s3997_s3 + $0x50] sm:$0xff]  ;;  %v3264_v33 = vld [vmem:[%s3997_s3 + $0x20] sm:$0xff]  ;;  %v3289_v38 = vld [vmem:[%s3997_s3 + $0xe8] sm:$0xff] }
 0x27d   :  { %v1518_v23 = vpop.f32.mrf.mxu2  ;;  %1822 = vmatpush.bf16.msrb.mxu1 %v3270_v30  ;;  %v3280_v31 = vld [vmem:[%s3997_s3 + $0xa0] sm:$0xff] }
 0x27e   :  { %v1534_v60 = vadd.f32 %v1518_v23, %v1392_v58  ;;  %v1246_v6 = vadd.f32 %v3710_v59, %v1104_v5  ;;  %v3257_v59 = vld [vmem:[%s3998_s4 + $0x8] sm:$0xff]  ;;  %v3287_v58 = vld [vmem:[%s3997_s3 + $0xd8] sm:$0xff]  ;;  %v3282_v23 = vld [vmem:[%s3997_s3 + $0xb0] sm:$0xff] }
 0x27f   :  { %v1379_v46 = vpop.f32.mrf.mxu1  ;;  %v3288_v0 = vld [vmem:[%s3997_s3 + $0xe0] sm:$0xff] }
 0x280   :  { %v1549_v47 = vpack.c.bf16 %v1534_v60, %v1533_v61  ;;  %v1393_v13 = vadd.f32 %v1379_v46, %v1251_v2  ;;  %v1388_v15 = vadd.f32 %v1366_v44, %v1246_v6  ;;  %v3274_v44 = vld [vmem:[%s3997_s3 + $0x70] sm:$0xff] }
 0x281   :  { %1892 = vmatpush.bf16.msrb.mxu2 %v3274_v44  ;;  %1823 = vmatpush.bf16.msrb.mxu1 %v3269_v45 }
 0x282   :  { %v1530_v19 = vadd.f32 %v1508_v42, %v1388_v15  ;;  %v3260_v42 = vld [vmem:[%s3997_s3] sm:$0xff] }
 0x283   :  { %1757 = vmatpush.bf16.msra.mxu0 %v3260_v42 }
 0x284   :  { %v1547_v26 = vpack.c.bf16 %v1530_v19, %v1529_v32 }
 0x285   :  { %v1521_v22 = vpop.f32.mrf.mxu2  ;;  %1893 = vmatpush.bf16.msrb.mxu2 %v3273_v56  ;;  %1824 = vmatpush.bf16.msrb.mxu1 %v3268_v4 }
 0x286   :  { %v1535_v17 = vadd.f32 %v1521_v22, %v1393_v13  ;;  %v3291_v13 = vld [vmem:[%s3997_s3 + $0xf8] sm:$0xff]  ;;  %v3290_v22 = vld [vmem:[%s3997_s3 + $0xf0] sm:$0xff] }
 0x287   :  { %v1381_v21 = vpop.f32.mrf.mxu1  ;;  %2031 = vmatpush.bf16.msrb.mxu0 %v3283_v57 }
 0x288   :  { %v1550_v7 = vpack.c.bf16 %v1535_v17, %v1535_v17  ;;  %v3276_v17 = vld [vmem:[%s3997_s3 + $0x80] sm:$0xff] }
 0x289   :  { %1894 = vmatpush.bf16.msrb.mxu2 %v3272_v49  ;;  %2101 = vmatpush.bf16.msra.mxu1 %v3287_v58 }
 0x28a   :  { %v1591_v55 = vsel %vm180_vm0, %v1550_v7, 0 }
 0x28b   :  { %1595 = vmatpush.bf16.msra.mxu3 %v1591_v55  ;;  %2032 = vmatpush.bf16.msrb.mxu0 %v3282_v23 }
 0x28d   :  { %v1523_v2 = vpop.f32.mrf.mxu2  ;;  %2102 = vmatpush.bf16.msra.mxu1 %v3286_v3  ;;  %2171 = vmatpush.bf16.msra.mxu2 %v3291_v13 }
 0x28f   :  { %1596 = vmatpush.bf16.msra.mxu3 %v1549_v47  ;;  %2033 = vmatpush.bf16.msrb.mxu0 %v3281_v29 }
 0x291   :  { %2103 = vmatpush.bf16.msra.mxu1 %v3285_v20  ;;  %2172 = vmatpush.bf16.msra.mxu2 %v3290_v22 }
 0x293   :  { %1597 = vmatpush.bf16.msra.mxu3 %v1548_v16  ;;  %2034 = vmatpush.bf16.msrb.mxu0 %v3280_v31 }
 0x295   :  { %2104 = vmatpush.bf16.msra.mxu1 %v3284_v1  ;;  %2173 = vmatpush.bf16.msra.mxu2 %v3289_v38 }
 0x297   :  { %1598 = vmatpush.bf16.msra.mxu3 %v1547_v26 }
 0x299   :  { %2174 = vmatpush.bf16.msra.mxu2 %v3288_v0 }
 0x29b   :  { %1599 = vmatpush.bf16.msra.mxu3 %v1546_v34 }
 0x29f   :  { %1600 = vmatpush.bf16.msra.mxu3 %v1545_v39  ;;  %v1573_v39 = vpack.c.b16 %v1568_v27, %v1568_v27  ;;  %v3294_v27 = vld [vmem:[%s3997_s3 + $0x110] sm:$0xff] }
 0x2a2   :  { %2907 = vmatmul.msk.bf16.vlgmr.msra.gmra.mxu3 %vm1574_vm2, %v3256_v12 }
 0x2a3   :  { %1706 = vmatpush.bf16.msrb.mxu3 %v3267_v8 }
 0x2a7   :  { %1707 = vmatpush.bf16.msrb.mxu3 %v3266_v35 }
 0x2ab   :  { %1708 = vmatpush.bf16.msrb.mxu3 %v3265_v52 }
 0x2af   :  { %1709 = vmatpush.bf16.msrb.mxu3 %v3264_v33 }
 0x2b2   :  { %2908 = vmatmul.msk.bf16.gmra.mxu3 %vm1574_vm2, %v3257_v59 }
 0x2b3   :  { %1961 = vmatpush.bf16.msra.mxu3 %v3279_v37 }
 0x2b7   :  { %1962 = vmatpush.bf16.msra.mxu3 %v3278_v51 }
 0x2bb   :  { %1963 = vmatpush.bf16.msra.mxu3 %v3277_v40 }
 0x2bf   :  { %1964 = vmatpush.bf16.msra.mxu3 %v3276_v17 }
 0x2c2   :  { %2909 = vmatmul.msk.bf16.gmra.mxu3 %vm1574_vm2, %v3258_v48 }
 0x2d2   :  { %2910 = vmatmul.msk.bf16.gmra.mxu3 %vm1574_vm2, %v3259_v24 }
 0x2e2   :  { %2911 = vmatmul.msk.bf16.gmra.mxu3 %vm1574_vm2, %v1573_v39 }
 0x325   :  { %v1602_v34 = vpop.f32.mrf.mxu3 }
 0x326   :  { %1627 = vst.msk [vmem:[#allocation3] sm:$0xff] %vm1626_vm3, %v1602_v34 }
 0x32d   :  { %v1604_v41 = vpop.f32.mrf.mxu3 }
 0x32e   :  { %1628 = vst.msk [vmem:[#allocation3 + $0x8] sm:$0xff] %vm1626_vm3, %v1604_v41 }
 0x335   :  { %v1607_v50 = vpop.f32.mrf.mxu3  ;;  %v1654_v61 = vld [vmem:[#allocation3 + $0x1] ss:$2 sm:$0xff]  ;;  %v1636_v60 = vld [vmem:[#allocation3] ss:$2 sm:$0xff] }
 0x336   :  { %1629 = vst.msk [vmem:[#allocation3 + $0x10] sm:$0xff] %vm1626_vm3, %v1607_v50 }
 0x33d   :  { %v1609_v14 = vpop.f32.mrf.mxu3  ;;  %v1769_v21 = vld [vmem:[#allocation3 + $0x2] ss:$2 sm:$0xff]  ;;  %v1909_v34 = vld [vmem:[#allocation3 + $0x7] ss:$2 sm:$0xff] }
 0x33e   :  { %1630 = vst.msk [vmem:[#allocation3 + $0x18] sm:$0xff] %vm1626_vm3, %v1609_v14  ;;  %v1839_v7 = vld [vmem:[#allocation3 + $0x6] ss:$2 sm:$0xff] }
 0x33f   :  { %v1979_v30 = vld [vmem:[#allocation3 + $0x8] ss:$2 sm:$0xff] }
 0x345   :  { %v1612_v62 = vpop.f32.mrf.mxu3  ;;  %v1656_v46 = vld [vmem:[#allocation3 + $0x11] ss:$2 sm:$0xff]  ;;  %v1638_v47 = vld [vmem:[#allocation3 + $0x10] ss:$2 sm:$0xff] }
 0x346   :  { %1631 = vst.msk [vmem:[#allocation3 + $0x20] sm:$0xff] %vm1626_vm3, %v1612_v62  ;;  %v1661_v10 = vpack.c.bf16 %v1656_v46, %v1654_v61  ;;  %v1643_v53 = vpack.c.bf16 %v1638_v47, %v1636_v60  ;;  %v2049_v45 = vld [vmem:[#allocation3 + $0xc] ss:$2 sm:$0xff]  ;;  %v2119_v4 = vld [vmem:[#allocation3 + $0xd] ss:$2 sm:$0xff] }
 0x348   :  { %2936 = vmatmul.msk.bf16.vlgmr.msrb.gmra.mxu3 %vm1626_vm3, %v1661_v10  ;;  %2954 = vmatmul.msk.bf16.vlgmr.msra.gmra.mxu0 %vm1626_vm3, %v1643_v53  ;;  %v2189_v10 = vld [vmem:[#allocation3 + $0xe] ss:$2 sm:$0xff] }
 0x349   :  { %2241 = vmatpush.bf16.msrb.mxu3 %v3295_v63 }
 0x34d   :  { %v1614_v5 = vpop.f32.mrf.mxu3  ;;  %v1771_v54 = vld [vmem:[#allocation3 + $0x12] ss:$2 sm:$0xff]  ;;  %2242 = vmatpush.bf16.msrb.mxu3 %v3294_v27  ;;  %v1911_v52 = vld [vmem:[#allocation3 + $0x17] ss:$2 sm:$0xff] }
 0x34e   :  { %v1841_v55 = vld [vmem:[#allocation3 + $0x16] ss:$2 sm:$0xff]  ;;  %1632 = vst.msk [vmem:[#allocation3 + $0x28] sm:$0xff] %vm1626_vm3, %v1614_v5  ;;  %v1776_v36 = vpack.c.bf16 %v1771_v54, %v1769_v21  ;;  %v1916_v44 = vpack.c.bf16 %v1911_v52, %v1909_v34 }
 0x34f   :  { %v1846_v6 = vpack.c.bf16 %v1841_v55, %v1839_v7  ;;  %v1981_v18 = vld [vmem:[#allocation3 + $0x18] ss:$2 sm:$0xff] }
 0x350   :  { %2980 = vmatmul.msk.bf16.vlgmr.msrb.gmra.mxu1 %vm1626_vm3, %v1776_v36  ;;  %v1986_v42 = vpack.c.bf16 %v1981_v18, %v1979_v30 }
 0x351   :  { %3006 = vmatmul.msk.bf16.vlgmr.msrb.gmra.mxu2 %vm1626_vm3, %v1846_v6  ;;  %2243 = vmatpush.bf16.msrb.mxu3 %v3293_v25 }
 0x355   :  { %v1617_v2 = vpop.f32.mrf.mxu3  ;;  %v1658_v15 = vld [vmem:[#allocation3 + $0x21] ss:$2 sm:$0xff]  ;;  %v1640_v11 = vld [vmem:[#allocation3 + $0x20] ss:$2 sm:$0xff]  ;;  %2244 = vmatpush.bf16.msrb.mxu3 %v3292_v28 }
 0x356   :  { %1633 = vst.msk [vmem:[#allocation3 + $0x30] sm:$0xff] %vm1626_vm3, %v1617_v2  ;;  %v2051_v43 = vld [vmem:[#allocation3 + $0x1c] ss:$2 sm:$0xff]  ;;  %v2121_v41 = vld [vmem:[#allocation3 + $0x1d] ss:$2 sm:$0xff] }
 0x357   :  { %v2056_v56 = vpack.c.bf16 %v2051_v43, %v2049_v45  ;;  %v2126_v49 = vpack.c.bf16 %v2121_v41, %v2119_v4  ;;  %v2191_v3 = vld [vmem:[#allocation3 + $0x1e] ss:$2 sm:$0xff]  ;;  %v2262_v43 = vstv %s3999_s5 }
 0x358   :  { %v2196_v53 = vpack.c.bf16 %v2191_v3, %v2189_v10 }
 0x35d   :  { %v1619_v19 = vpop.f32.mrf.mxu3  ;;  %v1660_v16 = vld [vmem:[#allocation3 + $0x31] ss:$2 sm:$0x3]  ;;  %v1642_v32 = vld [vmem:[#allocation3 + $0x30] ss:$2 sm:$0x3] }
 0x35e   :  { %1634 = vst.msk [vmem:[#allocation3 + $0x38] sm:$0xff] %vm1626_vm3, %v1619_v19  ;;  %v1662_v26 = vpack.c.bf16 %v1660_v16, %v1658_v15  ;;  %v1644_v12 = vpack.c.bf16 %v1642_v32, %v1640_v11  ;;  %v1773_v59 = vld [vmem:[#allocation3 + $0x22] ss:$2 sm:$0xff]  ;;  %v1775_v48 = vld [vmem:[#allocation3 + $0x32] ss:$2 sm:$0x3] }
 0x35f   :  { %v1777_v24 = vpack.c.bf16 %v1775_v48, %v1773_v59  ;;  %v1843_v39 = vld [vmem:[#allocation3 + $0x26] ss:$2 sm:$0xff]  ;;  %v1913_v58 = vld [vmem:[#allocation3 + $0x27] ss:$2 sm:$0xff] }
 0x360   :  { %2937 = vmatmul.msk.bf16.gmra.mxu3 %vm1626_vm3, %v1662_v26  ;;  %2955 = vmatmul.msk.bf16.gmra.mxu0 %vm1626_vm3, %v1644_v12  ;;  %v1983_v51 = vld [vmem:[#allocation3 + $0x28] ss:$2 sm:$0xff] }
 0x361   :  { %2981 = vmatmul.msk.bf16.gmra.mxu1 %vm1626_vm3, %v1777_v24 }
 0x365   :  { %v1845_v8 = vld [vmem:[#allocation3 + $0x36] ss:$2 sm:$0x3]  ;;  %v1622_v9 = vpop.f32.mrf.mxu3  ;;  %v1915_v50 = vld [vmem:[#allocation3 + $0x37] ss:$2 sm:$0x3] }
 0x366   :  { %v1847_v35 = vpack.c.bf16 %v1845_v8, %v1843_v39  ;;  %1635 = vst.msk [vmem:[#allocation3 + $0x40] sm:$0xff] %vm1626_vm3, %v1622_v9  ;;  %v1985_v14 = vld [vmem:[#allocation3 + $0x38] ss:$2 sm:$0x3]  ;;  %v1917_v23 = vpack.c.bf16 %v1915_v50, %v1913_v58  ;;  %v2123_v62 = vld [vmem:[#allocation3 + $0x2d] ss:$2 sm:$0xff] }
 0x367   :  { %v2053_v37 = vld [vmem:[#allocation3 + $0x2c] ss:$2 sm:$0xff]  ;;  %v2055_v57 = vld [vmem:[#allocation3 + $0x3c] ss:$2 sm:$0x3]  ;;  %v1987_v61 = vpack.c.bf16 %v1985_v14, %v1983_v51 }
 0x368   :  { %3007 = vmatmul.msk.bf16.gmra.mxu2 %vm1626_vm3, %v1847_v35  ;;  %v2057_v60 = vpack.c.bf16 %v2055_v57, %v2053_v37  ;;  %v2125_v46 = vld [vmem:[#allocation3 + $0x3d] ss:$2 sm:$0x3]  ;;  %v2193_v13 = vld [vmem:[#allocation3 + $0x2e] ss:$2 sm:$0xff] }
 0x369   :  { %v2127_v47 = vpack.c.bf16 %v2125_v46, %v2123_v62 }
 0x36d   :  { %v1624_v33 = vpop.f32.mrf.mxu3  ;;  %v2195_v40 = vld [vmem:[#allocation3 + $0x3e] ss:$2 sm:$0x3] }
 0x36e   :  { %v2197_v29 = vpack.c.bf16 %v2195_v40, %v2193_v13 }
 0x370   :  { %3032 = vmatmul.msk.bf16.vlgmr.msra.gmra.mxu3 %vm1626_vm3, %v1916_v44  ;;  %3058 = vmatmul.msk.bf16.vlgmr.msrb.gmra.mxu0 %vm1626_vm3, %v1986_v42 }
 0x371   :  { %3084 = vmatmul.msk.bf16.vlgmr.msra.gmra.mxu1 %vm1626_vm3, %v2056_v56 }
 0x378   :  { %3110 = vmatmul.msk.bf16.vlgmr.msra.gmra.mxu2 %vm1626_vm3, %v2126_v49 }
 0x380   :  { %3033 = vmatmul.msk.bf16.gmra.mxu3 %vm1626_vm3, %v1917_v23  ;;  %3059 = vmatmul.msk.bf16.gmra.mxu0 %vm1626_vm3, %v1987_v61 }
 0x381   :  { %3085 = vmatmul.msk.bf16.gmra.mxu1 %vm1626_vm3, %v2057_v60 }
 0x388   :  { %3111 = vmatmul.msk.bf16.gmra.mxu2 %vm1626_vm3, %v2127_v47 }
 0x390   :  { %3136 = vmatmul.msk.bf16.vlgmr.msrb.gmra.mxu3 %vm1626_vm3, %v2196_v53 }
 0x3a0   :  { %3137 = vmatmul.msk.bf16.gmra.mxu3 %vm1626_vm3, %v2197_v29 }
 0x3c5   :  { %v1759_v20 = vpop.f32.mrf.mxu0 }
 0x3cb   :  { %v1711_v22 = vpop.f32.mrf.mxu3 }
 0x3cc   :  { %v1760_v48 = vadd.f32 %v1759_v20, %v1711_v22 }
 0x3cd   :  { %v1826_v17 = vpop.f32.mrf.mxu1  ;;  %v1761_v31 = vpop.f32.mrf.mxu0 }
 0x3ce   :  { %v1835_v27 = vadd.f32 %v1826_v17, %v1760_v48  ;;  %v3303_v31 = vld [vmem:[%s4000_s6 + $0x38] sm:$0xff] }
 0x3cf   :  { %2376 = vmatpush.bf16.msra.mxu0 %v3303_v31 }
 0x3d3   :  { %v1713_v21 = vpop.f32.mrf.mxu3 }
 0x3d4   :  { %v1896_v7 = vpop.f32.mrf.mxu2  ;;  %v3302_v21 = vld [vmem:[%s4000_s6 + $0x30] sm:$0xff] }
 0x3d5   :  { %v1828_v5 = vpop.f32.mrf.mxu1  ;;  %v1905_v39 = vadd.f32 %v1896_v7, %v1835_v27  ;;  %2377 = vmatpush.bf16.msra.mxu0 %v3302_v21  ;;  %v3301_v7 = vld [vmem:[%s4000_s6 + $0x28] sm:$0xff] }
 0x3d6   :  { %v3300_v5 = vld [vmem:[%s4000_s6 + $0x20] sm:$0xff] }
 0x3d9   :  { %2378 = vmatpush.bf16.msra.mxu0 %v3301_v7 }
 0x3dc   :  { %v1898_v54 = vpop.f32.mrf.mxu2 }
 0x3dd   :  { %v1763_v55 = vpop.f32.mrf.mxu0  ;;  %2379 = vmatpush.bf16.msra.mxu0 %v3300_v5  ;;  %v3299_v54 = vld [vmem:[%s4000_s6 + $0x18] sm:$0xff] }
 0x3de   :  { %v1830_v1 = vpop.f32.mrf.mxu1 }
 0x3e1   :  { %2380 = vmatpush.bf16.msra.mxu0 %v3299_v54 }
 0x3e3   :  { %v1715_v36 = vpop.f32.mrf.mxu3 }
 0x3e4   :  { %v1764_v25 = vadd.f32 %v1763_v55, %v1715_v36  ;;  %v3298_v55 = vld [vmem:[%s4000_s6 + $0x10] sm:$0xff] }
 0x3e5   :  { %v1765_v6 = vpop.f32.mrf.mxu0  ;;  %2381 = vmatpush.bf16.msra.mxu0 %v3298_v55 }
 0x3e6   :  { %v1832_v38 = vpop.f32.mrf.mxu1  ;;  %v1836_v34 = vadd.f32 %v1830_v1, %v1764_v25  ;;  %v3297_v1 = vld [vmem:[%s4000_s6 + $0x8] sm:$0xff] }
 0x3e9   :  { %2382 = vmatpush.bf16.msra.mxu0 %v3297_v1 }
 0x3eb   :  { %v1717_v0 = vpop.f32.mrf.mxu3  ;;  %v1900_v2 = vpop.f32.mrf.mxu2 }
 0x3ec   :  { %v1906_v33 = vadd.f32 %v1900_v2, %v1836_v34  ;;  %v1766_v42 = vadd.f32 %v1765_v6, %v1717_v0  ;;  %v3296_v6 = vld [vmem:[%s4000_s6] sm:$0xff] }
 0x3ed   :  { %v2036_v15 = vpop.f32.mrf.mxu0  ;;  %2383 = vmatpush.bf16.msra.mxu0 %v3296_v6 }
 0x3ee   :  { %v2106_v11 = vpop.f32.mrf.mxu1  ;;  %v1837_v49 = vadd.f32 %v1832_v38, %v1766_v42 }
 0x3f3   :  { %v1902_v19 = vpop.f32.mrf.mxu2  ;;  %v1966_v16 = vpop.f32.mrf.mxu3 }
 0x3f4   :  { %v1975_v8 = vadd.f32 %v1966_v16, %v1905_v39  ;;  %v1907_v57 = vadd.f32 %v1902_v19, %v1837_v49 }
 0x3f5   :  { %v2038_v32 = vpop.f32.mrf.mxu0 }
 0x3f6   :  { %v2108_v26 = vpop.f32.mrf.mxu1  ;;  %v2045_v35 = vadd.f32 %v2036_v15, %v1975_v8  ;;  %v3308_v32 = vld [vmem:[%s4001_s7] ss:$0 sm:$0xff] }
 0x3f8   :  { %v2115_v28 = vadd.f32 %v2106_v11, %v2045_v35 }
 0x3fb   :  { %v1968_v12 = vpop.f32.mrf.mxu3  ;;  %v2176_v59 = vpop.f32.mrf.mxu2 }
 0x3fc   :  { %v2185_v52 = vadd.f32 %v2176_v59, %v2115_v28 }
 0x3fd   :  { %v2040_v41 = vpop.f32.mrf.mxu0 }
 0x3fe   :  { %v2110_v14 = vpop.f32.mrf.mxu1 }
 0x403   :  { %v1970_v24 = vpop.f32.mrf.mxu3  ;;  %v2178_v63 = vpop.f32.mrf.mxu2 }
 0x404   :  { %v1976_v45 = vadd.f32 %v1970_v24, %v1906_v33 }
 0x405   :  { %v2042_v61 = vpop.f32.mrf.mxu0 }
 0x406   :  { %v2046_v50 = vadd.f32 %v2040_v41, %v1976_v45  ;;  %v2112_v3 = vpop.f32.mrf.mxu1 }
 0x408   :  { %v2116_v51 = vadd.f32 %v2110_v14, %v2046_v50 }
 0x40b   :  { %v1972_v9 = vpop.f32.mrf.mxu3  ;;  %v2180_v37 = vpop.f32.mrf.mxu2 }
 0x40c   :  { %v1977_v58 = vadd.f32 %v1972_v9, %v1907_v57  ;;  %v2186_v23 = vadd.f32 %v2180_v37, %v2116_v51 }
 0x40e   :  { %v2047_v62 = vadd.f32 %v2042_v61, %v1977_v58 }
 0x410   :  { %v2117_v53 = vadd.f32 %v2112_v3, %v2047_v62 }
 0x413   :  { %v2246_v18 = vpop.f32.mrf.mxu3  ;;  %v2182_v10 = vpop.f32.mrf.mxu2 }
 0x414   :  { %v2255_v30 = vadd.f32 %v2246_v18, %v2185_v52  ;;  %v2187_v13 = vadd.f32 %v2182_v10, %v2117_v53 }
 0x416   :  { %vm2259_vm4 = vcmp.gt.f32.partialorder %v2255_v30, 0.0  ;;  %v2263_v44 = vmul.f32 %v2262_v43, %v2255_v30 }
 0x418   :  { %v2266_v56 = vsel %vm2259_vm4, %v2255_v30, %v2263_v44 }
 0x419   :  { %2282 = vrot.lane.b32.xlu2 %v2266_v56, %s3335_s19  ;;  %2277 = vrot.lane.b32.xlu1 %v2266_v56, %s3336_s20  ;;  %2270 = vst.msk [vmem:[#allocation4] sm:$0x1] %vm2269_vm5, %v2266_v56 }
 0x41a   :  { %2272 = vrot.lane.b32.xlu0 %v2266_v56, %s3337_s21 }
 0x41b   :  { %v2248_v4 = vpop.f32.mrf.mxu3 }
 0x423   :  { %v2250_v60 = vpop.f32.mrf.mxu3 }
 0x424   :  { %v2256_v46 = vadd.f32 %v2250_v60, %v2186_v23 }
 0x426   :  { %v2264_v47 = vmul.f32 %v2262_v43, %v2256_v46  ;;  %vm2260_vm6 = vcmp.gt.f32.partialorder %v2256_v46, 0.0 }
 0x428   :  { %v2267_v40 = vsel %vm2260_vm6, %v2256_v46, %v2264_v47 }
 0x429   :  { %2288 = vst.msk [vmem:[#allocation4 - $0x1] sm:$0x4] %vm2287_vm7, %v2267_v40  ;;  %2290 = vrot.lane.b32.xlu0 %v2267_v40, %s3337_s21 }
 0x42b   :  { %v2252_v29 = vpop.f32.mrf.mxu3 }
 0x42c   :  { %v2257_v20 = vadd.f32 %v2252_v29, %v2187_v13 }
 0x42e   :  { %v2265_v22 = vmul.f32 %v2262_v43, %v2257_v20  ;;  %vm2261_vm8 = vcmp.gt.f32.partialorder %v2257_v20, 0.0 }
 0x430   :  { %v2268_v17 = vsel %vm2261_vm8, %v2257_v20, %v2265_v22 }
 0x431   :  { %2301 = vrot.lane.b32.xlu2 %v2268_v17, %s3335_s19  ;;  %2296 = vrot.lane.b32.xlu1 %v2268_v17, %s3336_s20 }
 0x473   :  { %v2283_v0 = vpop.permute.xlu2 %2282 }
 0x48b   :  { %v2278_v36 = vpop.permute.xlu1 %2277  ;;  %v2302_v11 = vpop.permute.xlu2 %2301 }
 0x48c   :  { %v2273_v38 = vpop.permute.xlu0 %2272 }
 0x48d   :  { %2276 = vst.msk [vmem:[#allocation4 - $0x1] sm:$0x2] %vm2275_vm9, %v2273_v38 }
 0x48e   :  { %2281 = vst.msk [vmem:[#allocation4 - $0x6] sm:$0x40] %vm2280_vm10, %v2278_v36 }
 0x48f   :  { %2286 = vst.msk [vmem:[#allocation4 - $0x7] sm:$0x80] %vm2285_vm11, %v2283_v0 }
 0x49b   :  { %v2291_v2 = vpop.permute.xlu0 %2290 }
 0x49c   :  { %2294 = vst.msk [vmem:[#allocation4 - $0x2] sm:$0x8] %vm2293_vm12, %v2291_v2 }
 0x4a3   :  { %v2297_v15 = vpop.permute.xlu1 %2296 }
 0x4a4   :  { %2300 = vst.msk [vmem:[#allocation4 + $0x1] sm:$0x1] %vm2299_vm13, %v2297_v15 }
 0x4a5   :  { %2305 = vst.msk [vmem:[#allocation4] sm:$0x2] %vm2304_vm14, %v2302_v11 }
 0x4ac   :  { %v2306_v19 = vld [vmem:[#allocation4] sm:$0x3] }
 0x4ad   :  { %v2307_v16 = vpack.c.bf16 %v2306_v19, %v2306_v19 }
 0x4af   :  { %2384 = vmatmul.bf16.vlgmr.msra.gmra.mxu0 %v2307_v16 }
 0x52c   :  { %v2385_v26 = vpop.f32.mrf.mxu0 }
 0x52d   :  { %v2386_v12 = vadd.f32 %v3308_v32, %v2385_v26 }
 0x52f   :  { %2389 = vst [vmem:[#allocation6] sm:$0x3] %v2386_v12 }
 0x530   :  { %2400 = dma.vmem_to_hbm [thread:$0]  %s2396_s15, 32, %s2398_s1, [#allocation7]  }
 0x534   :  { %v2387_v59 = vpop.f32.mrf.mxu0 }
 0x535   :  { %3333 = dma.done.wait [#allocation7], 32  }
 0x536   :  { %3334 = vsyncadd [#allocation7], 4294967264 }
 0x537   :  { %2405 = vsyncpa [#allocation7], 1 }

</bundles_post_ra>
